<compile_context>
chip_gen: v5e
topology: v5e:2x2
jax: 0.10.0
libtpu: 0.0.40
codegen_flags: <defaults>
</compile_context>

<pallas_src>
import jax
import jax.numpy as jnp
from jax import lax
from jax.experimental import pallas as pl
from jax.experimental.pallas import tpu as pltpu


def _round_up(v, m):
    return (v + m - 1) // m * m


def up_conv_forward(x, weight, gamma, beta, eps=1e-5):
    """x: (N, C_in, H, W) f32, weight: (C_out, C_in, 3, 3) f32, gamma/beta: (C_out,)."""
    N, C_in, H, W = x.shape
    C_out = weight.shape[0]
    Hu, Wu = 2 * H, 2 * W                     # upsampled spatial size
    Qo = Hu * Wu                              # flattened valid conv outputs per image
    # flat input: 1 leading zero + (Hu+2) rows of width Wu (H-pad only) + slack,
    # rounded to a lane multiple.  Tap (kh, kw) is the static lane slice starting
    # at kh*Wu + kw; the out-of-row side-tap reads are masked on the output side.
    Pf = _round_up(Qo + 2 * Wu + 2, 128)

    # C_out tiling gives a second "parallel" grid axis (v7x megacore) and bounds
    # the per-step output block; fall back to a single tile when not divisible.
    co_t = C_out if (C_out <= 256 or C_out % 256 != 0) else 256
    n_co = C_out // co_t

    # Small-C_in: fold all 9 taps into a single MXU contraction (K = 9*C_in_k),
    # with C_in padded to the bf16 sublane tile so the in-VMEM tap stack is
    # tile-aligned.  Large C_in: keep the 9-matmul form (register-accumulated).
    fold_taps = C_in <= 32
    C_in_k = _round_up(C_in, 16) if fold_taps else C_in

    # ---- glue (input-sized, cheap): bf16 nearest-2x upsample + H-pad + flatten ----
    xb = x.astype(jnp.bfloat16)
    xu = jnp.repeat(jnp.repeat(xb, 2, axis=2), 2, axis=3)            # (N, C_in, Hu, Wu)
    xup = jnp.pad(xu, ((0, 0), (0, C_in_k - C_in), (1, 1), (0, 0)))  # + zero rows / chans
    xf = xup.reshape(N, C_in_k, (Hu + 2) * Wu)
    xf = jnp.pad(xf, ((0, 0), (0, 0), (1, Pf - 1 - (Hu + 2) * Wu)))  # (N, C_in_k, Pf)

    if fold_taps:
        # packed weights: (C_out, 9*C_in_k), tap-major (kh, kw), channel minor
        wk = jnp.transpose(weight, (0, 2, 3, 1))                     # (C_out, 3, 3, C_in)
        wk = jnp.pad(wk, ((0, 0), (0, 0), (0, 0), (0, C_in_k - C_in)))
        wk = wk.reshape(C_out, 9 * C_in_k).astype(jnp.bfloat16)
        w_spec = pl.BlockSpec((co_t, 9 * C_in_k), lambda n, c: (c, 0))
    else:
        # per-tap weights: w[kh*3+kw] = weight[:, :, kh, kw]
        wk = jnp.transpose(weight, (2, 3, 0, 1)).reshape(9, C_out, C_in).astype(jnp.bfloat16)
        w_spec = pl.BlockSpec((9, co_t, C_in), lambda n, c: (0, c, 0))

    # ---- kernel 1: fused im2col-free 3x3 conv (+ BN partial statistics) ----
    def conv_stats_kernel(x_ref, w_ref, y_ref, sum_ref, sq_ref):
        # x_ref: (1, C_in_k, Pf) bf16   flattened, H-padded, upsampled image
        # w_ref: packed / per-tap weights (bf16)
        # y_ref: (1, co_t, Qo)    bf16  lane-dense, junk-free conv output
        # sum_ref / sq_ref: (1, co_t, 1) f32 per-(image, C_out-tile) partial sums
        col = lax.broadcasted_iota(jnp.int32, (1, Qo), 1) % Wu
        if fold_taps:
            ml = (col != 0).astype(jnp.bfloat16)        # left tap invalid at col 0
            mr = (col != Wu - 1).astype(jnp.bfloat16)   # right tap invalid at col Wu-1
            pieces = []
            for kh in range(3):                          # static unroll over taps
                for kw in range(3):
                    start = kh * Wu + kw                 # static lane offset of this tap
                    s = x_ref[0, :, start:start + Qo]    # (C_in_k, Qo) bf16
                    if kw == 0:
                        s = s * ml
                    elif kw == 2:
                        s = s * mr
                    pieces.append(s)
            rhs = jnp.concatenate(pieces, axis=0)        # (9*C_in_k, Qo), tile-aligned stack
            acc = lax.dot_general(w_ref[...], rhs, (((1,), (0,)), ((), ())),
                                  preferred_element_type=jnp.float32)   # (co_t, Qo)
        else:
            ml = (col != 0).astype(jnp.float32)
            mr = (col != Wu - 1).astype(jnp.float32)
            acc = None                                   # register-carried accumulator
            for kw in range(3):
                part = None
                for kh in range(3):
                    start = kh * Wu + kw
                    s = x_ref[0, :, start:start + Qo]    # (C_in, Qo) bf16
                    d = lax.dot_general(w_ref[kh * 3 + kw], s, (((1,), (0,)), ((), ())),
                                        preferred_element_type=jnp.float32)
                    part = d if part is None else part + d
                if kw == 0:
                    part = part * ml                     # mask the per-column partial (cheap)
                elif kw == 2:
                    part = part * mr
                acc = part if acc is None else acc + part
        sum_ref[0] = jnp.sum(acc, axis=1, keepdims=True)          # (co_t, 1)
        sq_ref[0] = jnp.sum(acc * acc, axis=1, keepdims=True)
        # NOTE: BN stats come from the f32 accumulator; y is rounded to bf16
        # below, so the normalized tensor differs from exact f32 by bf16 rounding.
        y_ref[0] = acc.astype(jnp.bfloat16)

    y_flat, csum, csq = pl.pallas_call(
        conv_stats_kernel,
        out_shape=(jax.ShapeDtypeStruct((N, C_out, Qo), jnp.bfloat16),
                   jax.ShapeDtypeStruct((N, C_out, 1), jnp.float32),
                   jax.ShapeDtypeStruct((N, C_out, 1), jnp.float32)),
        grid_spec=pltpu.PrefetchScalarGridSpec(
            num_scalar_prefetch=0,
            grid=(N, n_co),
            in_specs=[pl.BlockSpec((1, C_in_k, Pf), lambda n, c: (n, 0, 0)),
                      w_spec],
            out_specs=(pl.BlockSpec((1, co_t, Qo), lambda n, c: (n, c, 0)),
                       pl.BlockSpec((1, co_t, 1), lambda n, c: (n, c, 0)),
                       pl.BlockSpec((1, co_t, 1), lambda n, c: (n, c, 0)))),
        compiler_params=pltpu.CompilerParams(
            dimension_semantics=("parallel", "parallel"),
            vmem_limit_bytes=64 * 1024 * 1024),
    )(xf, wk)

    # ---- glue: finalize training-mode BN statistics (biased variance) ----
    cnt = float(N * Qo)
    mean = jnp.sum(csum, axis=0) / cnt                               # (C_out, 1)
    var = jnp.maximum(jnp.sum(csq, axis=0) / cnt - mean * mean, 0.0)
    inv = lax.rsqrt(var + eps)
    scale = gamma.astype(jnp.float32).reshape(C_out, 1) * inv        # (C_out, 1)
    shift = beta.astype(jnp.float32).reshape(C_out, 1) - mean * scale

    # ---- kernel 2: fused BN affine + ReLU, fully lane-dense in and out ----
    def bn_relu_kernel(y_ref, s_ref, b_ref, o_ref):
        z = y_ref[0].astype(jnp.float32) * s_ref[...] + b_ref[...]   # (co_t, Qo)
        o_ref[0] = jnp.maximum(z, 0.0)

    out_flat = pl.pallas_call(
        bn_relu_kernel,
        out_shape=jax.ShapeDtypeStruct((N, C_out, Qo), jnp.float32),
        grid_spec=pltpu.PrefetchScalarGridSpec(
            num_scalar_prefetch=0,
            grid=(N, n_co),
            in_specs=[pl.BlockSpec((1, co_t, Qo), lambda n, c: (n, c, 0)),
                      pl.BlockSpec((co_t, 1), lambda n, c: (c, 0)),
                      pl.BlockSpec((co_t, 1), lambda n, c: (c, 0))],
            out_specs=pl.BlockSpec((1, co_t, Qo), lambda n, c: (n, c, 0))),
        compiler_params=pltpu.CompilerParams(
            dimension_semantics=("parallel", "parallel"),
            vmem_limit_bytes=64 * 1024 * 1024),
    )(y_flat, scale, shift)

    # free row-major metadata reshape to NCHW (no data movement)
    return out_flat.reshape(N, C_out, Hu, Wu)


def up_conv_reference(x, weight, gamma, beta, eps=1e-5):
    """Pure-XLA f32 reference of the PyTorch module (for a loose self-check)."""
    xu = jnp.repeat(jnp.repeat(x, 2, axis=2), 2, axis=3)
    y = lax.conv_general_dilated(
        xu, weight, window_strides=(1, 1), padding=((1, 1), (1, 1)),
        dimension_numbers=('NCHW', 'OIHW', 'NCHW'))
    mean = jnp.mean(y, axis=(0, 2, 3), keepdims=True)
    var = jnp.mean((y - mean) ** 2, axis=(0, 2, 3), keepdims=True)
    yn = (y - mean) * lax.rsqrt(var + eps)
    return jnp.maximum(yn * gamma.reshape(1, -1, 1, 1) + beta.reshape(1, -1, 1, 1), 0.0)


if __name__ == "__main__":
    # Small shapes consistent with the module: up_conv(ch_in=4, ch_out=8)
    N, C_in, H, W = 2, 4, 16, 16
    C_out = 8

    key = jax.random.PRNGKey(0)
    kx, kw = jax.random.split(key)
    x = jax.random.normal(kx, (N, C_in, H, W), dtype=jnp.float32)
    weight = 0.1 * jax.random.normal(kw, (C_out, C_in, 3, 3), dtype=jnp.float32)
    gamma = 1.0 + 0.1 * jnp.arange(C_out, dtype=jnp.float32)
    beta = 0.05 * jnp.arange(C_out, dtype=jnp.float32)

    out = up_conv_forward(x, weight, gamma, beta)
    out = jax.block_until_ready(out)
    assert out.shape == (N, C_out, 2 * H, 2 * W)

    # loose correctness check vs. the f32 XLA reference (kernel uses bf16 on the MXU)
    ref = up_conv_reference(x, weight, gamma, beta)
    assert float(jnp.max(jnp.abs(out - ref))) < 0.5

    print("KERNEL_OK")
</pallas_src>

<mosaic_0001>
module attributes {stable_mosaic.version = 11 : i64} {
  func.func @conv_stats_kernel(%arg0: i32, %arg1: i32, %arg2: memref<1x16x1152xbf16, #tpu.memory_space<vmem>>, %arg3: memref<8x144xbf16, #tpu.memory_space<vmem>>, %arg4: memref<1x8x1024xbf16, #tpu.memory_space<vmem>>, %arg5: memref<1x8x1xf32, #tpu.memory_space<vmem>>, %arg6: memref<1x8x1xf32, #tpu.memory_space<vmem>>) attributes {dimension_semantics = [#tpu.dimension_semantics<parallel>, #tpu.dimension_semantics<parallel>], iteration_bounds = array<i64: 2, 1>, scalar_prefetch = 0 : i64, scratch_operands = 0 : i64, tpu.core_type = #tpu.core_type<tc>, window_params = [{transform_indices = @transform_0, window_bounds = array<i64: 1, 16, 1152>}, {transform_indices = @transform_1, window_bounds = array<i64: 8, 144>}, {transform_indices = @transform_2, window_bounds = array<i64: 1, 8, 1024>}, {transform_indices = @transform_3, window_bounds = array<i64: 1, 8, 1>}, {transform_indices = @transform_4, window_bounds = array<i64: 1, 8, 1>}]} {
    %0 = tpu.iota {dimensions = array<i32: 1>} : vector<1x1024xi32>
    %c32_i32 = arith.constant 32 : i32
    %c0_i32 = arith.constant 0 : i32
    %1 = arith.cmpi eq, %c32_i32, %c0_i32 : i32
    %c1_i32 = arith.constant 1 : i32
    %2 = arith.select %1, %c1_i32, %c32_i32 : i32
    %3 = vector.broadcast %2 : i32 to vector<1x1024xi32>
    %4 = arith.remsi %0, %3 : vector<1x1024xi32>
    %c0_i32_0 = arith.constant 0 : i32
    %5 = vector.broadcast %c0_i32_0 : i32 to vector<1x1024xi32>
    %6 = arith.cmpi ne, %4, %5 : vector<1x1024xi32>
    %c0_i32_1 = arith.constant 0 : i32
    %7 = vector.broadcast %c0_i32_1 : i32 to vector<1x1024xi32>
    %8 = arith.cmpi slt, %4, %7 : vector<1x1024xi32>
    %c0_i32_2 = arith.constant 0 : i32
    %9 = arith.cmpi slt, %2, %c0_i32_2 : i32
    %10 = vector.broadcast %9 : i1 to vector<1x1024xi1>
    %11 = vector.broadcast %10 : vector<1x1024xi1> to vector<1x1024xi1>
    %12 = arith.xori %8, %11 : vector<1x1024xi1>
    %13 = arith.andi %12, %6 : vector<1x1024xi1>
    %14 = vector.broadcast %2 : i32 to vector<1x1024xi32>
    %15 = arith.addi %4, %14 : vector<1x1024xi32>
    %16 = arith.select %13, %15, %4 : vector<1x1024xi1>, vector<1x1024xi32>
    %c0_i32_3 = arith.constant 0 : i32
    %17 = vector.broadcast %c0_i32_3 : i32 to vector<1x1024xi32>
    %18 = arith.cmpi ne, %16, %17 : vector<1x1024xi32>
    %19 = arith.extui %18 : vector<1x1024xi1> to vector<1x1024xi32>
    %20 = arith.sitofp %19 : vector<1x1024xi32> to vector<1x1024xf32>
    %21 = arith.truncf %20 : vector<1x1024xf32> to vector<1x1024xbf16>
    %c31_i32 = arith.constant 31 : i32
    %22 = vector.broadcast %c31_i32 : i32 to vector<1x1024xi32>
    %23 = arith.cmpi ne, %16, %22 : vector<1x1024xi32>
    %24 = arith.extui %23 : vector<1x1024xi1> to vector<1x1024xi32>
    %25 = arith.sitofp %24 : vector<1x1024xi32> to vector<1x1024xf32>
    %26 = arith.truncf %25 : vector<1x1024xf32> to vector<1x1024xbf16>
    %c0 = arith.constant 0 : index
    %c0_4 = arith.constant 0 : index
    %c0_5 = arith.constant 0 : index
    %27 = vector.load %arg2[%c0, %c0_4, %c0_5] : memref<1x16x1152xbf16, #tpu.memory_space<vmem>>, vector<1x16x1024xbf16>
    %28 = vector.shape_cast %27 : vector<1x16x1024xbf16> to vector<16x1024xbf16>
    %29 = vector.broadcast %21 : vector<1x1024xbf16> to vector<16x1024xbf16>
    %30 = arith.mulf %28, %29 : vector<16x1024xbf16>
    %c0_6 = arith.constant 0 : index
    %c0_7 = arith.constant 0 : index
    %c1 = arith.constant 1 : index
    %31 = vector.load %arg2[%c0_6, %c0_7, %c1] : memref<1x16x1152xbf16, #tpu.memory_space<vmem>>, vector<1x16x1024xbf16>
    %32 = vector.shape_cast %31 : vector<1x16x1024xbf16> to vector<16x1024xbf16>
    %c0_8 = arith.constant 0 : index
    %c0_9 = arith.constant 0 : index
    %c2 = arith.constant 2 : index
    %33 = vector.load %arg2[%c0_8, %c0_9, %c2] : memref<1x16x1152xbf16, #tpu.memory_space<vmem>>, vector<1x16x1024xbf16>
    %34 = vector.shape_cast %33 : vector<1x16x1024xbf16> to vector<16x1024xbf16>
    %35 = vector.broadcast %26 : vector<1x1024xbf16> to vector<16x1024xbf16>
    %36 = arith.mulf %34, %35 : vector<16x1024xbf16>
    %c0_10 = arith.constant 0 : index
    %c0_11 = arith.constant 0 : index
    %c32 = arith.constant 32 : index
    %37 = vector.load %arg2[%c0_10, %c0_11, %c32] : memref<1x16x1152xbf16, #tpu.memory_space<vmem>>, vector<1x16x1024xbf16>
    %38 = vector.shape_cast %37 : vector<1x16x1024xbf16> to vector<16x1024xbf16>
    %39 = vector.broadcast %21 : vector<1x1024xbf16> to vector<16x1024xbf16>
    %40 = arith.mulf %38, %39 : vector<16x1024xbf16>
    %c0_12 = arith.constant 0 : index
    %c0_13 = arith.constant 0 : index
    %c33 = arith.constant 33 : index
    %41 = vector.load %arg2[%c0_12, %c0_13, %c33] : memref<1x16x1152xbf16, #tpu.memory_space<vmem>>, vector<1x16x1024xbf16>
    %42 = vector.shape_cast %41 : vector<1x16x1024xbf16> to vector<16x1024xbf16>
    %c0_14 = arith.constant 0 : index
    %c0_15 = arith.constant 0 : index
    %c34 = arith.constant 34 : index
    %43 = vector.load %arg2[%c0_14, %c0_15, %c34] : memref<1x16x1152xbf16, #tpu.memory_space<vmem>>, vector<1x16x1024xbf16>
    %44 = vector.shape_cast %43 : vector<1x16x1024xbf16> to vector<16x1024xbf16>
    %45 = vector.broadcast %26 : vector<1x1024xbf16> to vector<16x1024xbf16>
    %46 = arith.mulf %44, %45 : vector<16x1024xbf16>
    %c0_16 = arith.constant 0 : index
    %c0_17 = arith.constant 0 : index
    %c64 = arith.constant 64 : index
    %47 = vector.load %arg2[%c0_16, %c0_17, %c64] : memref<1x16x1152xbf16, #tpu.memory_space<vmem>>, vector<1x16x1024xbf16>
    %48 = vector.shape_cast %47 : vector<1x16x1024xbf16> to vector<16x1024xbf16>
    %49 = vector.broadcast %21 : vector<1x1024xbf16> to vector<16x1024xbf16>
    %50 = arith.mulf %48, %49 : vector<16x1024xbf16>
    %c0_18 = arith.constant 0 : index
    %c0_19 = arith.constant 0 : index
    %c65 = arith.constant 65 : index
    %51 = vector.load %arg2[%c0_18, %c0_19, %c65] : memref<1x16x1152xbf16, #tpu.memory_space<vmem>>, vector<1x16x1024xbf16>
    %52 = vector.shape_cast %51 : vector<1x16x1024xbf16> to vector<16x1024xbf16>
    %c0_20 = arith.constant 0 : index
    %c0_21 = arith.constant 0 : index
    %c66 = arith.constant 66 : index
    %53 = vector.load %arg2[%c0_20, %c0_21, %c66] : memref<1x16x1152xbf16, #tpu.memory_space<vmem>>, vector<1x16x1024xbf16>
    %54 = vector.shape_cast %53 : vector<1x16x1024xbf16> to vector<16x1024xbf16>
    %55 = vector.broadcast %26 : vector<1x1024xbf16> to vector<16x1024xbf16>
    %56 = arith.mulf %54, %55 : vector<16x1024xbf16>
    %57 = tpu.concatenate %30, %32, %36, %40, %42, %46, %50, %52, %56 in 0 : vector<16x1024xbf16>, vector<16x1024xbf16>, vector<16x1024xbf16>, vector<16x1024xbf16>, vector<16x1024xbf16>, vector<16x1024xbf16>, vector<16x1024xbf16>, vector<16x1024xbf16>, vector<16x1024xbf16> -> vector<144x1024xbf16>
    %c0_22 = arith.constant 0 : index
    %c0_23 = arith.constant 0 : index
    %58 = vector.load %arg3[%c0_22, %c0_23] : memref<8x144xbf16, #tpu.memory_space<vmem>>, vector<8x144xbf16>
    %cst = arith.constant dense<0.000000e+00> : vector<8x1024xf32>
    %59 = tpu.matmul %58, %57, %cst {dimension_numbers = #tpu.dot_dimension_numbers<[1], [0], [0], [1], [0, 0, 1, 1], [], []>} : vector<8x144xbf16>, vector<144x1024xbf16>, vector<8x1024xf32> -> vector<8x1024xf32>
    %cst_24 = arith.constant dense<0.000000e+00> : vector<8xf32>
    %60 = vector.multi_reduction <add>, %59, %cst_24 [1] : vector<8x1024xf32> to vector<8xf32>
    %61 = vector.shape_cast %60 : vector<8xf32> to vector<8x1xf32>
    %c0_25 = arith.constant 0 : index
    %c0_26 = arith.constant 0 : index
    %c0_27 = arith.constant 0 : index
    %62 = vector.load %arg5[%c0_25, %c0_26, %c0_27] : memref<1x8x1xf32, #tpu.memory_space<vmem>>, vector<1x8x1xf32>
    %63 = vector.shape_cast %62 : vector<1x8x1xf32> to vector<8x1xf32>
    %64 = vector.shape_cast %61 : vector<8x1xf32> to vector<1x8x1xf32>
    tpu.vector_store %arg5[%c0_25, %c0_26, %c0_27], %64 {strides = array<i32>} : memref<1x8x1xf32, #tpu.memory_space<vmem>>, vector<1x8x1xf32>,
    %65 = arith.mulf %59, %59 : vector<8x1024xf32>
    %cst_28 = arith.constant dense<0.000000e+00> : vector<8xf32>
    %66 = vector.multi_reduction <add>, %65, %cst_28 [1] : vector<8x1024xf32> to vector<8xf32>
    %67 = vector.shape_cast %66 : vector<8xf32> to vector<8x1xf32>
    %c0_29 = arith.constant 0 : index
    %c0_30 = arith.constant 0 : index
    %c0_31 = arith.constant 0 : index
    %68 = vector.load %arg6[%c0_29, %c0_30, %c0_31] : memref<1x8x1xf32, #tpu.memory_space<vmem>>, vector<1x8x1xf32>
    %69 = vector.shape_cast %68 : vector<1x8x1xf32> to vector<8x1xf32>
    %70 = vector.shape_cast %67 : vector<8x1xf32> to vector<1x8x1xf32>
    tpu.vector_store %arg6[%c0_29, %c0_30, %c0_31], %70 {strides = array<i32>} : memref<1x8x1xf32, #tpu.memory_space<vmem>>, vector<1x8x1xf32>,
    %71 = arith.truncf %59 : vector<8x1024xf32> to vector<8x1024xbf16>
    %c0_32 = arith.constant 0 : index
    %c0_33 = arith.constant 0 : index
    %c0_34 = arith.constant 0 : index
    %72 = vector.load %arg4[%c0_32, %c0_33, %c0_34] : memref<1x8x1024xbf16, #tpu.memory_space<vmem>>, vector<1x8x1024xbf16>
    %73 = vector.shape_cast %72 : vector<1x8x1024xbf16> to vector<8x1024xbf16>
    %74 = vector.shape_cast %71 : vector<8x1024xbf16> to vector<1x8x1024xbf16>
    tpu.vector_store %arg4[%c0_32, %c0_33, %c0_34], %74 {strides = array<i32>} : memref<1x8x1024xbf16, #tpu.memory_space<vmem>>, vector<1x8x1024xbf16>,
    return
  }
  func.func @transform_0(%arg0: i32, %arg1: i32) -> (i32, i32, i32) {
    %c0_i32 = arith.constant 0 : i32
    %c0_i32_0 = arith.constant 0 : i32
    %c0_i32_1 = arith.constant 0 : i32
    return %arg0, %c0_i32, %c0_i32_0 : i32, i32, i32
  }
  func.func @transform_1(%arg0: i32, %arg1: i32) -> (i32, i32) {
    %c0_i32 = arith.constant 0 : i32
    %c0_i32_0 = arith.constant 0 : i32
    return %arg1, %c0_i32 : i32, i32
  }
  func.func @transform_2(%arg0: i32, %arg1: i32) -> (i32, i32, i32) {
    %c0_i32 = arith.constant 0 : i32
    %c0_i32_0 = arith.constant 0 : i32
    return %arg0, %arg1, %c0_i32 : i32, i32, i32
  }
  func.func @transform_3(%arg0: i32, %arg1: i32) -> (i32, i32, i32) {
    %c0_i32 = arith.constant 0 : i32
    %c0_i32_0 = arith.constant 0 : i32
    return %arg0, %arg1, %c0_i32 : i32, i32, i32
  }
  func.func @transform_4(%arg0: i32, %arg1: i32) -> (i32, i32, i32) {
    %c0_i32 = arith.constant 0 : i32
    %c0_i32_0 = arith.constant 0 : i32
    return %arg0, %arg1, %c0_i32 : i32, i32, i32
  }
}

</mosaic_0001>

<bundles_post_ra>
// kernel: tpu_custom_call.1
= control target key start
LH: loop header
LB: loop body
LE: loop exit
PB: predicated region body
PF: predicated region fallthrough
CT: control target
= control target key end

     0   :  { %s3378_s0 = inlined_call_operand.hbm [shape: bf16[2,16,1152], index: 0, kind: input, shape index: {}]   ;;  %s3379_s1 = inlined_call_operand.hbm [shape: bf16[8,144], index: 1, kind: input, shape index: {}]   ;;  %s3380_s2 = inlined_call_operand.hbm [shape: bf16[2,8,1024], index: 2, kind: output, shape index: {0}]   ;;  %s3381_s3 = inlined_call_operand.vmem [shape: f32[2,8,1], index: 3, kind: output, shape index: {1}]   ;;  %s3382_s4 = inlined_call_operand.vmem [shape: f32[2,8,1], index: 4, kind: output, shape index: {2}]  }
   0x1   :  { %3385 = sst [smem:[#allocation12_spill]] %s3379_s1 }
   0x2   :  { %10 = vsyncpa [#allocation3], 0 }
   0x3   :  { %12 = vsyncpa [#allocation3 + $0x1], 0 }
   0x4   :  { %13 = vsyncpa [#allocation6], 0 }
   0x5   :  { %14 = vsyncpa [#allocation4], 0 }
   0x6   :  { %16 = vsyncpa [#allocation4 + $0x1], 0  ;;  %s2325_s15 = smov 0   ;;  %s2327_s16 = smov 0  }
   0x7   :  { %s2329_s17 = smov 0   ;;  %s2331_s18 = smov 0  }
   0x8   :  { %s2333_s19 = smov 0   ;;  %s2335_s20 = smov 0  }
   0x9 LB: > { %3386 = sst [smem:[#allocation11_spill]] %s2282_s20  ;;  %s1859_s21 = sadd.s32 4294967295, %s2282_s20   ;;  %s2282_s20 = sphi %s2335_s20, %s22_s20   ;;  %s2278_s19 = sphi %s2333_s19, %s3402_s19   ;;  %s2274_s18 = sphi %s2331_s18, %s3401_s18   ;;  %s2270_s17 = sphi %s2329_s17, %s3400_s17   ;;  %s2266_s16 = sphi %s2327_s16, %s3399_s16   ;;  %s2262_s15 = sphi %s2325_s15, %s3398_s15  }
   0xa   : > { %s1860_s22 = sadd.s32 4294967294, %s2282_s20   ;;  %s41_s23 = sadd.s32 1, %s2270_s17 }
   0xb   : > { %p48_p0 = scmp.ne.s32.totalorder %s2270_s17, %s2266_s16  ;;  %p49_p1 = scmp.eq.s32.totalorder %s2282_s20, 0 }
   0xc   : > { %p54_p2 = scmp.ne.s32.totalorder %s2266_s16, %s2262_s15  ;;  %p2363_p3 = scmp.eq.s32.totalorder %s1859_s21, 0 }
   0xd   : > { %p106_p4 = scmp.eq.s32.totalorder %s1859_s21, 1  ;;  %p2367_p5 = por %p49_p1, %p48_p0 }
   0xe   : > { %p112_p6 = scmp.eq.s32.totalorder %s1860_s22, 1  ;;  %p2373_p7 = por %p2363_p3, %p54_p2 }
   0xf   : > { %p2377_p8 = por %p106_p4, %p48_p0  ;;  %p1861_p10 = scmp.ge.s32.totalorder %s2282_s20, 1 }
  0x10   : > { %p2381_p9 = por %p112_p6, %p54_p2  ;;  %p175_p11 = scmp.lt.s32.totalorder %s2282_s20, 3 }
  0x11   : > { %s3392_s1 = sld [smem:[#allocation12_spill]]  ;;  %s2284_s7 = smov [#allocation5]  }
  0x12   : > { %p2390_p12 = pnand %p1861_p10, %p175_p11  ;;  %s192_s8 = sshll.u32 %s2284_s7, 4  ;;  %s193_s8 = int_to_ptr.vmem [resolvable:$true] %s192_s8 }
  0x13   : > { %p1863_p13 = scmp.ge.s32.totalorder %s2282_s20, 2  ;;  %p1969_p1 = scmp.lt.s32.totalorder %s2282_s20, 2 }
  0x14   : > { %p1956_p0 = pneg %p2390_p12  ;;  %s34_s10 = sadd.s32 1, %s2278_s19 }
  0x15   : > { %p2402_p4 = pnand %p1969_p1, %p2367_p5  ;;  %p36_p6 = scmp.ge.s32.totalorder %s34_s10, 2 }
  0x16   : > { %p1957_p2 = pnand %p1956_p0, %p2363_p3  ;;  %s203_s11 = sand.u32 1, %s2270_s17  }
  0x17   : > { %s190_s5 = sshll.u32 %s3392_s1, 4  ;;  %s3404_s10 = smov (%p36_p6, %s34_s10), 0  ;;  %s191_s5 = int_to_ptr.hbm [resolvable:$true] %s190_s5 }
  0x18   : > { %1959 = dma.hbm_to_vmem [thread:$0]  (!%p1957_p2), %s191_s5, 128, %s193_s8, [#allocation6]  }
  0x19   : > { %s1945_s12 = smul.u32 72, %s203_s11  ;;  %s38_s13 = ssub.s32 %s2278_s19, %s3404_s10 }
  0x1a   : > { %s1946_s14 = smul.u32 72, %s2278_s19  ;;  %p39_p10 = scmp.eq.s32.totalorder %s38_s13, 0 }
  0x1b   : > { %s207_s29 = scalar_lea.vmem [#allocation2], %s1945_s12  ;;  %s204_s5 = scalar_lea.sflag [#allocation3], %s203_s11 }
  0x1c   : > { %s212_s25 = scalar_lea.hbm %s3378_s0, %s1946_s14  ;;  %s215_s30 = sshll.u32 %s207_s29, 4  ;;  %s216_s30 = int_to_ptr.vmem [resolvable:$true] %s215_s30 }
  0x1d   : > { %s2419_s7 = scalar_select %p39_p10, %s2270_s17, %s41_s23  }
  0x1e   : > { %s213_s1 = sshll.u32 %s212_s25, 4  ;;  %s2285_s8 = smov 576   ;;  %s214_s1 = int_to_ptr.hbm [resolvable:$true] %s213_s1 }
  0x1f   : > { %s2286_s20 = smov 36   ;;  %227 = sbr.rel (%p2390_p12) target bundleno = 722 (0x2d2), region = 28 }
  0x20   : > { %1963 = dma.hbm_to_vmem [thread:$0]  (!%p2402_p4), %s214_s1, 1152, %s216_s30, %s204_s5, %s2285_s8, %s2285_s8, %s2286_s20  }
  0x21   : > { %s2426_s13 = sand.u32 (!%p2390_p12), 1, %s2266_s16  }
  0x22   : > { %s1947_s12 = smul.u32 (!%p2390_p12), 72, %s2426_s13  ;;  %s230_s23 = scalar_lea.sflag (!%p2390_p12), [#allocation3], %s2426_s13 }
  0x24   : > { %s2430_s14 = scalar_lea.vmem [#allocation2], %s1947_s12 }
  0x25   : > { %2249 = dma.done.wait (%p2373_p7), %s230_s23, 1152  }
  0x26   : > { %2251 = vsyncadd (%p2373_p7), %s230_s23, 4294966144  ;;  %v293_v0 = vlaneseq }
  0x27   : > { %2253 = dma.done.wait (%p2363_p3), [#allocation6], 128  }
  0x28   : > { %2255 = vsyncadd (%p2363_p3), [#allocation6], 4294967168  ;;  %v294_v1 = vand.u32 127, %v293_v0  ;;  %v2287_v14 = vmov 0.0   ;;  %s2288_s1 = smov 2   ;;  %s2289_s20 = smov 64  }
  0x29   : > { %s2290_s24 = smov 34   ;;  %s2291_s26 = smov 32   ;;  %v1935_v43 = vld [vmem:[%s2430_s14 + $0x4] sm:$0xf]  ;;  %v1890_v44 = vld [vmem:[%s2430_s14 + $0x24] sm:$0xf0] }
  0x2a   : > { %v298_v2 = vadd.s32 512, %v294_v1  ;;  %v299_v3 = vadd.s32 640, %v294_v1  ;;  %v295_v4 = vadd.s32 128, %v294_v1  ;;  %v306_v5 = vand.u32 31, %v294_v1  ;;  %s2292_s6 = smov 66   ;;  %s2293_s9 = smov 63  }
  0x2b   : > { %v296_v6 = vadd.s32 256, %v294_v1  ;;  %v297_v7 = vadd.s32 384, %v294_v1  ;;  %v300_v30 = vadd.s32 768, %v294_v1  ;;  %v301_v31 = vadd.s32 896, %v294_v1  ;;  %v1888_v45 = vld [vmem:[%s2430_s14] sm:$0xf] }
  0x2c   : > { %v334_v8 = vand.u32 31, %v298_v2  ;;  %v341_v9 = vand.u32 31, %v299_v3  ;;  %v313_v10 = vand.u32 31, %v295_v4  ;;  %vm426_vm0 = vcmp.ne.s32.totalorder %v306_v5, 31  ;;  %v1939_v46 = vld [vmem:[%s2430_s14 + $0x20] sm:$0xf0] }
  0x2d   : > { %v320_v11 = vand.u32 31, %v296_v6  ;;  %v327_v12 = vand.u32 31, %v297_v7  ;;  %vm2440_vm3 = vcmp.ne.s32.totalorder %v306_v5, 0  ;;  %v1878_v17 = vsel %vm426_vm0, 1.0, %v2287_v14  ;;  %v1896_v48 = vld [vmem:[%s2430_s14 + $0x8] sm:$0xf] }
  0x2e   : > { %vm430_vm1 = vcmp.ne.s32.totalorder %v334_v8, 31  ;;  %vm431_vm2 = vcmp.ne.s32.totalorder %v341_v9, 31  ;;  %vm427_vm4 = vcmp.ne.s32.totalorder %v313_v10, 31  ;;  %vm399_vm5 = vcmp.ne.s32.totalorder %v313_v10, 0  ;;  %v1940_v49 = vld [vmem:[%s2430_s14 + $0x28] sm:$0xf0] }
  0x2f   : > { %v1882_v15 = vsel %vm430_vm1, 1.0, %v2287_v14  ;;  %v1883_v16 = vsel %vm431_vm2, 1.0, %v2287_v14  ;;  %v1879_v19 = vsel %vm427_vm4, 1.0, %v2287_v14  ;;  %vm400_vm6 = vcmp.ne.s32.totalorder %v320_v11, 0  ;;  %v1936_v52 = vld [vmem:[%s2430_s14 + $0xc] sm:$0xf] }
  0x30   : > { %v2046_v18 = vpack.i.bf16 %v1883_v16, %v1882_v15  ;;  %v2036_v20 = vpack.i.bf16 %v1879_v19, %v1878_v17  ;;  %vm401_vm7 = vcmp.ne.s32.totalorder %v327_v12, 0  ;;  %v2444_v21 = vsel %vm400_vm6, 1.0, %v2287_v14  ;;  %v1898_v53 = vld [vmem:[%s2430_s14 + $0x2c] sm:$0xf0]  ;;  %s2294_s11 = smov 95   ;;  %s2295_s21 = smov 127  }
  0x31   : > { %vm428_vm8 = vcmp.ne.s32.totalorder %v320_v11, 31  ;;  %v2447_v22 = vsel %vm401_vm7, 1.0, %v2287_v14  ;;  %vm429_vm9 = vcmp.ne.s32.totalorder %v327_v12, 31  ;;  %v2454_v24 = vsel %vm2440_vm3, 1.0, %v2287_v14  ;;  %v511_v63 = vld [vmem:[%s2430_s14 + $0x8] sm:$0xff]  ;;  %v510_v1 = vld [vmem:[%s2430_s14] sm:$0xff] }
  0x32   : > { %2047 = vrot.lane.b32.xlu1 %v2046_v18, %s2288_s1  ;;  %2037 = vrot.lane.b32.xlu0 %v2036_v20, %s2288_s1  ;;  %v2056_v23 = vpack.i.bf16 %v2447_v22, %v2444_v21  ;;  %v2456_v25 = vsel %vm399_vm5, 1.0, %v2287_v14  ;;  %v1880_v26 = vsel %vm428_vm8, 1.0, %v2287_v14  ;;  %v1881_v27 = vsel %vm429_vm9, 1.0, %v2287_v14  ;;  %v516_v0 = vld [vmem:[%s2430_s14 + $0x2c] sm:$0xff]  ;;  %v515_v5 = vld [vmem:[%s2430_s14 + $0x24] sm:$0xff]  ;;  %s2296_s22 = smov 94  }
  0x33   : > { %v2051_v28 = vpack.i.bf16 %v2456_v25, %v2454_v24  ;;  %v2041_v29 = vpack.i.bf16 %v1881_v27, %v1880_v26  ;;  %vm403_vm10 = vcmp.ne.s32.totalorder %v341_v9, 0  ;;  %vm402_vm11 = vcmp.ne.s32.totalorder %v334_v8, 0  ;;  %s2297_s25 = smov 96   ;;  %s2298_s29 = smov 126  }
  0x34   : > { %2057 = vrot.lane.b32.xlu2 %v2056_v23, %s2289_s20  ;;  %v348_v32 = vand.u32 31, %v300_v30  ;;  %v355_v33 = vand.u32 31, %v301_v31  ;;  %v2467_v34 = vsel %vm402_vm11, 1.0, %v2287_v14  ;;  %v2469_v35 = vsel %vm403_vm10, 1.0, %v2287_v14  ;;  %s2299_s30 = smov 62   ;;  %s1867_s5 = sshll.u32 %s2426_s13, 5 }
  0x35   : > { %v2091_v36 = vpack.i.bf16 %v2469_v35, %v2467_v34  ;;  %v1893_v47 = vor.u32 %v1935_v43, %v1890_v44  ;;  %v1889_v50 = vor.u32 %v1939_v46, %v1888_v45  ;;  %v1897_v51 = vor.u32 %v1940_v49, %v1896_v48  ;;  %s3325_s8 = scalar_lea.vmem [#allocation7], %s1867_s5  ;;  %s1944_s12 = sshll.u32 %s2274_s18, 5 }
  0x36   : > { %vm404_vm12 = vcmp.ne.s32.totalorder %v348_v32, 0  ;;  %vm405_vm13 = vcmp.ne.s32.totalorder %v355_v33, 0  ;;  %vm432_vm14 = vcmp.ne.s32.totalorder %v348_v32, 31  ;;  %vm433_vm15 = vcmp.ne.s32.totalorder %v355_v33, 31 }
  0x37   : > { %v2475_v37 = vsel %vm404_vm12, 1.0, %v2287_v14  ;;  %v2477_v38 = vsel %vm405_vm13, 1.0, %v2287_v14  ;;  %v1884_v40 = vsel %vm432_vm14, 1.0, %v2287_v14  ;;  %v1885_v41 = vsel %vm433_vm15, 1.0, %v2287_v14 }
  0x38   : > { %v2101_v39 = vpack.i.bf16 %v2477_v38, %v2475_v37  ;;  %v2111_v42 = vpack.i.bf16 %v1885_v41, %v1884_v40  ;;  %v1901_v54 = vor.u32 %v1936_v52, %v1898_v53  ;;  %vm570_vm0 = vcmask 15360  }
  0x39   : > { %vm761_vm1 = vcmask 523264   ;;  %v2528_v2 = vunpack.c.h.bf16 %v511_v63  ;;  %v2530_v3 = vunpack.c.h.bf16 %v516_v0  ;;  %vm700_vm2 = vcmask 277504  }
  0x3a   : > { %2052 = vrot.lane.b32.xlu1 %v2051_v28, %s2289_s20  ;;  %2042 = vrot.lane.b32.xlu0 %v2041_v29, %s2288_s1  ;;  %v2536_v9 = vunpack.c.l.bf16 %v510_v1  ;;  %v2541_v15 = vunpack.c.h.bf16 %v510_v1  ;;  %v2543_v16 = vunpack.c.l.bf16 %v515_v5  ;;  %v2545_v17 = vunpack.c.h.bf16 %v515_v5 }
  0x3b   : > { %vm639_vm3 = vcmask 261120   ;;  %vm822_vm4 = vcmask 539648   ;;  %vm1320_vm5 = vcmask 515072   ;;  %vm1141_vm6 = vcmask 777216  }
  0x3c   : > { %2062 = vrot.lane.b32.xlu2 %v2036_v20, %s2290_s24  ;;  %vm962_vm7 = vcmask 1039360   ;;  %vm1213_vm8 = vcmask 769024   ;;  %vm1106_vm9 = vcmask 785408   ;;  %vm1034_vm10 = vcmask 1031168  }
  0x3d   : > { %vm1392_vm11 = vcmask 506880   ;;  %vm1416_vm12 = vcmask 130048  }
  0x42   : > { %2072 = vrot.lane.b32.xlu1 %v2051_v28, %s2291_s26  ;;  %2067 = vrot.lane.b32.xlu0 %v2041_v29, %s2290_s24 }
  0x44   : > { %2077 = vrot.lane.b32.xlu2 %v2056_v23, %s2291_s26 }
  0x4a   : > { %2087 = vrot.lane.b32.xlu1 %v2041_v29, %s2292_s6  ;;  %2082 = vrot.lane.b32.xlu0 %v2036_v20, %s2292_s6  ;;  %v2554_v20 = vunpack.c.l.bf16 %v516_v0 }
  0x4c   : > { %2092 = vrot.lane.b32.xlu2 %v2091_v36, %s2289_s20 }
  0x52   : > { %2102 = vrot.lane.b32.xlu1 %v2101_v39, %s2289_s20  ;;  %2097 = vrot.lane.b32.xlu0 %v2046_v18, %s2290_s24 }
  0x54   : > { %2107 = vrot.lane.b32.xlu2 %v2091_v36, %s2291_s26 }
  0x5a   : > { %2117 = vrot.lane.b32.xlu1 %v2046_v18, %s2292_s6  ;;  %2112 = vrot.lane.b32.xlu0 %v2111_v42, %s2290_s24  ;;  %v2547_v18 = vunpack.c.l.bf16 %v511_v63 }
  0x5c   : > { %2122 = vrot.lane.b32.xlu2 %v2101_v39, %s2291_s26  ;;  %s1666_s26 = scalar_lea.sflag [#allocation4], %s2426_s13 }
  0x62   : > { %1304 = vrot.lane.b32.xlu1 %v1893_v47, %s2293_s9  ;;  %1302 = vrot.lane.b32.xlu0 %v1889_v50, %s2293_s9 }
  0x64   : > { %1306 = vrot.lane.b32.xlu2 %v1897_v51, %s2293_s9 }
  0x6a   : > { %2127 = vrot.lane.b32.xlu1 %v2111_v42, %s2288_s1  ;;  %1308 = vrot.lane.b32.xlu0 %v1901_v54, %s2293_s9  ;;  %s1693_s1 = scalar_lea.hbm %s3380_s2, %s1944_s12 }
  0x6b   : > { %s1697_s24 = sshll.u32 %s1693_s1, 4  ;;  %s1698_s24 = int_to_ptr.hbm [resolvable:$true] %s1697_s24 }
  0x6c   : > { %1123 = vrot.lane.b32.xlu2 %v1889_v50, %s2294_s11 }
  0x72   : > { %2132 = vrot.lane.b32.xlu1 %v2111_v42, %s2292_s6  ;;  %1125 = vrot.lane.b32.xlu0 %v1893_v47, %s2294_s11  ;;  %s2210_s6 = sshra.s32 %s1698_s24, 4  ;;  %s2211_s6 = int_to_ptr.hbm [resolvable:$true] %s2210_s6 }
  0x73   : > { %p2217_p11 = scmp.lt.s32.totalorder %s2211_s6, %s3380_s2 }
  0x74   : > { %1129 = vrot.lane.b32.xlu2 %v1901_v54, %s2294_s11 }
  0x7a   : > { %1127 = vrot.lane.b32.xlu1 %v1897_v51, %s2294_s11  ;;  %946 = vrot.lane.b32.xlu0 %v1893_v47, %s2295_s21 }
  0x7c   : > { %944 = vrot.lane.b32.xlu2 %v1889_v50, %s2295_s21 }
  0x82   : > { %948 = vrot.lane.b32.xlu1 %v1897_v51, %s2295_s21 }
  0x84   : > { %950 = vrot.lane.b32.xlu2 %v1901_v54, %s2295_s21 }
  0x8e   : > { %v2510_v55 = vpop.permute.xlu2 %2057 }
  0x8f   : > { %v2060_v61 = vunpack.i.h.bf16 %v2510_v55  ;;  %v2059_v62 = vunpack.i.l.bf16 %v2510_v55 }
  0x91   : > { %v764_v7 = vsel %vm761_vm1, %v2059_v62, %v2060_v61 }
  0x92   : > { %v781_v26 = vmul.f32 %v764_v7, %v2528_v2  ;;  %v790_v27 = vmul.f32 %v764_v7, %v2530_v3 }
  0x96   : > { %v2063_v4 = vpop.permute.xlu2 %2062 }
  0x97   : > { %v2065_v8 = vunpack.i.h.bf16 %v2063_v4  ;;  %v2064_v11 = vunpack.i.l.bf16 %v2063_v4 }
  0x99   : > { %v701_v28 = vsel %vm700_vm2, %v2064_v11, %v2065_v8  ;;  %v717_v41 = vmul.f32 %v2064_v11, %v2536_v9  ;;  %v726_v43 = vmul.f32 %v2064_v11, %v2543_v16 }
  0x9a   : > { %v718_v42 = vmul.f32 %v701_v28, %v2541_v15  ;;  %v727_v44 = vmul.f32 %v701_v28, %v2545_v17 }
  0x9c   : > { %v735_v54 = vpack.c.bf16 %v718_v42, %v717_v41  ;;  %v740_v0 = vpack.c.bf16 %v727_v44, %v726_v43 }
  0x9e   : > { %v2580_v1 = vpop.permute.xlu2 %2077 }
  0x9f   : > { %v2080_v11 = vunpack.i.h.bf16 %v2580_v1  ;;  %v2079_v41 = vunpack.i.l.bf16 %v2580_v1 }
  0xa4   : > { %v2512_v56 = vpop.permute.xlu1 %2047  ;;  %v2516_v59 = vpop.permute.xlu0 %2037 }
  0xa5   : > { %v2050_v57 = vunpack.i.h.bf16 %v2512_v56  ;;  %v2049_v58 = vunpack.i.l.bf16 %v2512_v56 }
  0xa7   : > { %v2521_v60 = vsel %vm570_vm0, %v2049_v58, %v2050_v57 }
  0xac   : > { %v2053_v6 = vpop.permute.xlu1 %2052  ;;  %v2538_v10 = vpop.permute.xlu0 %2042 }
  0xad   : > { %v2045_v12 = vunpack.i.h.bf16 %v2538_v10  ;;  %v2055_v13 = vunpack.i.h.bf16 %v2053_v6  ;;  %v2054_v14 = vunpack.i.l.bf16 %v2053_v6 }
  0xaf   : > { %v2552_v19 = vsel %vm570_vm0, %v2045_v12, %v2049_v58  ;;  %v763_v23 = vsel %vm761_vm1, %v2055_v13, %v2059_v62  ;;  %v762_v29 = vsel %vm761_vm1, %v2054_v14, %v2055_v13  ;;  %v778_v30 = vmul.f32 %v2054_v14, %v2536_v9 }
  0xb0   : > { %v779_v31 = vmul.f32 %v762_v29, %v2541_v15  ;;  %v780_v32 = vmul.f32 %v763_v23, %v2547_v18  ;;  %v787_v33 = vmul.f32 %v2054_v14, %v2543_v16  ;;  %v788_v36 = vmul.f32 %v762_v29, %v2545_v17 }
  0xb1   : > { %v789_v39 = vmul.f32 %v763_v23, %v2554_v20  ;;  %v2040_v13 = vunpack.i.h.bf16 %v2516_v59  ;;  %v2039_v14 = vunpack.i.l.bf16 %v2516_v59 }
  0xb2   : > { %v797_v48 = vpack.c.bf16 %v781_v26, %v780_v32  ;;  %v796_v50 = vpack.c.bf16 %v779_v31, %v778_v30  ;;  %v801_v51 = vpack.c.bf16 %v788_v36, %v787_v33  ;;  %v1169_v33 = vunpack.c.h.b16 %v735_v54 }
  0xb3   : > { %v802_v49 = vpack.c.bf16 %v790_v27, %v789_v39  ;;  %v1178_v36 = vunpack.c.h.b16 %v740_v0  ;;  %v571_v42 = vsel %vm570_vm0, %v2039_v14, %v2040_v13 }
  0xb4   : > { %v2567_v40 = vpop.permute.xlu1 %2072  ;;  %v2573_v45 = vpop.permute.xlu0 %2067  ;;  %v1242_v62 = vunpack.c.l.b16 %v797_v48  ;;  %v1241_v4 = vunpack.c.h.b16 %v796_v50  ;;  %v1250_v5 = vunpack.c.h.b16 %v801_v51  ;;  %v1240_v6 = vunpack.c.l.b16 %v796_v50 }
  0xb5   : > { %v2075_v46 = vunpack.i.h.bf16 %v2567_v40  ;;  %v2074_v47 = vunpack.i.l.bf16 %v2567_v40  ;;  %v2070_v52 = vunpack.i.h.bf16 %v2573_v45  ;;  %v2069_v53 = vunpack.i.l.bf16 %v2573_v45 }
  0xb6   : > { %v1251_v63 = vunpack.c.l.b16 %v802_v49  ;;  %v1249_v7 = vunpack.c.l.b16 %v801_v51  ;;  %v1259_v29 = vpack.c.b16 %v1250_v5, %v1241_v4  ;;  %v1177_v40 = vunpack.c.l.b16 %v740_v0 }
  0xb7   : > { %v640_v58 = vsel %vm639_vm3, %v2074_v47, %v2075_v46  ;;  %v702_v27 = vsel %vm700_vm2, %v2065_v8, %v2069_v53  ;;  %v703_v28 = vsel %vm700_vm2, %v2069_v53, %v2070_v52  ;;  %v656_v31 = vmul.f32 %v2074_v47, %v2536_v9 }
  0xb8   : > { %v1260_v23 = vpack.c.b16 %v1251_v63, %v1242_v62  ;;  %v1258_v30 = vpack.c.b16 %v1249_v7, %v1240_v6  ;;  %v657_v32 = vmul.f32 %v640_v58, %v2541_v15  ;;  %v665_v59 = vmul.f32 %v2074_v47, %v2543_v16  ;;  %1269 = vrot.lane.b32.xlu0 %v1259_v29, %s2289_s20 }
  0xb9   : > { %v666_v39 = vmul.f32 %v640_v58, %v2545_v17  ;;  %v1168_v8 = vunpack.c.l.b16 %v735_v54  ;;  %v719_v43 = vmul.f32 %v702_v27, %v2547_v18  ;;  %v720_v44 = vmul.f32 %v703_v28, %v2528_v2 }
  0xba   : > { %1271 = vrot.lane.b32.xlu1 %v1260_v23, %s2289_s20  ;;  %1267 = vrot.lane.b32.xlu2 %v1258_v30, %s2289_s20  ;;  %v728_v50 = vmul.f32 %v702_v27, %v2554_v20  ;;  %v729_v47 = vmul.f32 %v703_v28, %v2530_v3  ;;  %v1243_v51 = vunpack.c.h.b16 %v797_v48  ;;  %v1252_v53 = vunpack.c.h.b16 %v802_v49 }
  0xbb   : > { %v1187_v58 = vpack.c.b16 %v1178_v36, %v1169_v33  ;;  %v2604_v62 = vpack.c.bf16 %v657_v32, %v656_v31  ;;  %v1186_v63 = vpack.c.b16 %v1177_v40, %v1168_v8  ;;  %v2606_v54 = vpack.c.bf16 %v666_v39, %v665_v59 }
  0xbc   : > { %v2585_v26 = vpop.permute.xlu1 %2087  ;;  %v642_v0 = vsel %vm639_vm3, %v2079_v41, %v2080_v11  ;;  %v587_v4 = vmul.f32 %v2039_v14, %v2536_v9  ;;  %v588_v5 = vmul.f32 %v571_v42, %v2541_v15  ;;  %v641_v7 = vsel %vm639_vm3, %v2075_v46, %v2079_v41  ;;  %v2083_v48 = vpop.permute.xlu0 %2082 }
  0xbd   : > { %v1261_v49 = vpack.c.b16 %v1252_v53, %v1243_v51  ;;  %v736_v23 = vpack.c.bf16 %v720_v44, %v719_v43  ;;  %v741_v27 = vpack.c.bf16 %v729_v47, %v728_v50  ;;  %v596_v28 = vmul.f32 %v2039_v14, %v2543_v16  ;;  %v2638_v51 = vpop.permute.xlu2 %2092 }
  0xbe   : > { %v597_v29 = vmul.f32 %v571_v42, %v2545_v17  ;;  %v1062_v30 = vunpack.c.h.b16 %v2604_v62  ;;  %v1071_v31 = vunpack.c.h.b16 %v2606_v54  ;;  %v659_v32 = vmul.f32 %v642_v0, %v2528_v2 }
  0xbf   : > { %v668_v46 = vmul.f32 %v642_v0, %v2530_v3  ;;  %v2044_v33 = vunpack.i.l.bf16 %v2538_v10  ;;  %v658_v14 = vmul.f32 %v641_v7, %v2547_v18  ;;  %v667_v36 = vmul.f32 %v641_v7, %v2554_v20 }
  0xc0   : > { %1195 = vrot.lane.b32.xlu0 %v1186_v63, %s2296_s22  ;;  %v1170_v59 = vunpack.c.l.b16 %v736_v23  ;;  %v1179_v39 = vunpack.c.l.b16 %v741_v27  ;;  %v1171_v8 = vunpack.c.h.b16 %v736_v23  ;;  %v1180_v40 = vunpack.c.h.b16 %v741_v27 }
  0xc1   : > { %v1080_v41 = vpack.c.b16 %v1071_v31, %v1062_v30  ;;  %v2628_v42 = vpack.c.bf16 %v588_v5, %v587_v4  ;;  %v2630_v43 = vpack.c.bf16 %v597_v29, %v596_v28  ;;  %v572_v44 = vsel %vm570_vm0, %v2040_v13, %v2044_v33 }
  0xc2   : > { %1197 = vrot.lane.b32.xlu1 %v1187_v58, %s2296_s22  ;;  %1273 = vrot.lane.b32.xlu2 %v1261_v49, %s2289_s20  ;;  %v573_v50 = vsel %vm570_vm0, %v2044_v33, %v2045_v12  ;;  %v1188_v53 = vpack.c.b16 %v1179_v39, %v1170_v59  ;;  %v1189_v58 = vpack.c.b16 %v1180_v40, %v1171_v8  ;;  %v2085_v4 = vunpack.i.h.bf16 %v2083_v48 }
  0xc3   : > { %v2640_v63 = vpack.c.bf16 %v659_v32, %v658_v14  ;;  %v2642_v0 = vpack.c.bf16 %v668_v46, %v667_v36  ;;  %v989_v13 = vunpack.c.l.b16 %v2628_v42  ;;  %v998_v10 = vunpack.c.l.b16 %v2630_v43  ;;  %v512_v36 = vld [vmem:[%s2430_s14 + $0x10] sm:$0xff] }
  0xc4   : > { %v2613_v6 = vpop.permute.xlu1 %2102  ;;  %v589_v12 = vmul.f32 %v572_v44, %v2547_v18  ;;  %v2090_v5 = vunpack.i.h.bf16 %v2585_v26  ;;  %v2089_v7 = vunpack.i.l.bf16 %v2585_v26  ;;  %v2650_v49 = vpop.permute.xlu0 %2097  ;;  %v590_v23 = vmul.f32 %v573_v50, %v2528_v2 }
  0xc5   : > { %v598_v27 = vmul.f32 %v572_v44, %v2554_v20  ;;  %v599_v28 = vmul.f32 %v573_v50, %v2530_v3  ;;  %v2084_v29 = vunpack.i.l.bf16 %v2083_v48  ;;  %v1063_v30 = vunpack.c.l.b16 %v2640_v63 }
  0xc6   : > { %v1072_v31 = vunpack.c.l.b16 %v2642_v0  ;;  %v1061_v32 = vunpack.c.l.b16 %v2604_v62  ;;  %v1070_v46 = vunpack.c.l.b16 %v2606_v54  ;;  %v824_v33 = vsel %vm822_vm4, %v2085_v4, %v2089_v7 }
  0xc7   : > { %v825_v14 = vsel %vm822_vm4, %v2089_v7, %v2090_v5  ;;  %v823_v59 = vsel %vm822_vm4, %v2084_v29, %v2085_v4  ;;  %v1007_v39 = vpack.c.b16 %v998_v10, %v989_v13  ;;  %v2669_v48 = vpack.c.bf16 %v590_v23, %v589_v12  ;;  %v517_v23 = vld [vmem:[%s2430_s14 + $0x34] sm:$0xff] }
  0xc8   : > { %1201 = vrot.lane.b32.xlu0 %v1189_v58, %s2296_s22  ;;  %v2671_v40 = vpack.c.bf16 %v599_v28, %v598_v27  ;;  %v839_v62 = vmul.f32 %v2084_v29, %v2536_v9  ;;  %v1081_v54 = vpack.c.b16 %v1072_v31, %v1063_v30  ;;  %v1079_v44 = vpack.c.b16 %v1070_v46, %v1061_v32 }
  0xc9   : > { %v841_v50 = vmul.f32 %v824_v33, %v2547_v18  ;;  %v850_v58 = vmul.f32 %v824_v33, %v2554_v20  ;;  %v851_v13 = vmul.f32 %v825_v14, %v2530_v3  ;;  %v2681_v10 = vunpack.c.h.bf16 %v512_v36 }
  0xca   : > { %1090 = vrot.lane.b32.xlu1 %v1080_v41, %s2297_s25  ;;  %1199 = vrot.lane.b32.xlu2 %v1188_v53, %s2296_s22  ;;  %v2674_v41 = vpop.permute.xlu2 %2107  ;;  %v842_v53 = vmul.f32 %v825_v14, %v2528_v2  ;;  %v840_v9 = vmul.f32 %v823_v59, %v2541_v15  ;;  %v848_v12 = vmul.f32 %v2084_v29, %v2543_v16  ;;  %v2095_v18 = vunpack.i.h.bf16 %v2638_v51 }
  0xcb   : > { %v849_v4 = vmul.f32 %v823_v59, %v2545_v17  ;;  %v2094_v3 = vunpack.i.l.bf16 %v2638_v51  ;;  %v992_v20 = vunpack.c.h.b16 %v2669_v48  ;;  %v1001_v7 = vunpack.c.h.b16 %v2671_v40 }
  0xcc   : > { %v2636_v47 = vpop.permute.xlu1 %2117  ;;  %v2688_v2 = vpop.permute.xlu0 %2112  ;;  %v1064_v15 = vunpack.c.h.b16 %v2640_v63  ;;  %v1073_v16 = vunpack.c.h.b16 %v2642_v0  ;;  %v990_v17 = vunpack.c.h.b16 %v2628_v42  ;;  %v999_v27 = vunpack.c.h.b16 %v2630_v43 }
  0xcd   : > { %v2699_v28 = vunpack.c.l.bf16 %v512_v36  ;;  %v2701_v29 = vunpack.c.l.bf16 %v517_v23  ;;  %v2703_v30 = vpack.c.bf16 %v842_v53, %v841_v50  ;;  %v2705_v31 = vpack.c.bf16 %v851_v13, %v850_v58 }
  0xce   : > { %v2707_v32 = vpack.c.bf16 %v840_v9, %v839_v62  ;;  %v2709_v46 = vpack.c.bf16 %v849_v4, %v848_v12  ;;  %v2711_v33 = vunpack.c.h.bf16 %v517_v23  ;;  %v592_v63 = vmul.f32 %v2521_v60, %v2681_v10 }
  0xcf   : > { %v765_v42 = vsel %vm761_vm1, %v2060_v61, %v2094_v3  ;;  %v1010_v43 = vpack.c.b16 %v1001_v7, %v992_v20  ;;  %v766_v14 = vsel %vm761_vm1, %v2094_v3, %v2095_v18  ;;  %v1082_v36 = vpack.c.b16 %v1073_v16, %v1064_v15 }
  0xd0   : > { %1088 = vrot.lane.b32.xlu0 %v1079_v44, %s2297_s25  ;;  %v1008_v59 = vpack.c.b16 %v999_v27, %v990_v17  ;;  %v600_v55 = vmul.f32 %v2552_v19, %v2701_v29  ;;  %v1349_v61 = vunpack.c.l.b16 %v2703_v30  ;;  %v1358_v44 = vunpack.c.l.b16 %v2705_v31 }
  0xd1   : > { %v2099_v50 = vunpack.i.l.bf16 %v2650_v49  ;;  %v1356_v58 = vunpack.c.l.b16 %v2709_v46  ;;  %v601_v9 = vmul.f32 %v2521_v60, %v2711_v33  ;;  %v782_v12 = vmul.f32 %v765_v42, %v2699_v28 }
  0xd2   : > { %1016 = vrot.lane.b32.xlu1 %v1007_v39, %s2298_s29  ;;  %1092 = vrot.lane.b32.xlu2 %v1081_v54, %s2297_s25  ;;  %v2724_v62 = vpop.permute.xlu2 %2122  ;;  %v591_v54 = vmul.f32 %v2552_v19, %v2699_v28  ;;  %v1347_v19 = vunpack.c.l.b16 %v2707_v32  ;;  %v783_v4 = vmul.f32 %v766_v14, %v2681_v10  ;;  %v2100_v3 = vunpack.i.h.bf16 %v2650_v49 }
  0xd3   : > { %v791_v20 = vmul.f32 %v765_v42, %v2701_v29  ;;  %v792_v56 = vmul.f32 %v766_v14, %v2711_v33  ;;  %v1000_v7 = vunpack.c.l.b16 %v2671_v40  ;;  %v1367_v23 = vpack.c.b16 %v1358_v44, %v1349_v61  ;;  %v1937_v14 = vld [vmem:[%s2430_s14 + $0x14] sm:$0xf] }
  0xd4   : > { %v2667_v8 = vpop.permute.xlu1 %1304  ;;  %v1303_v13 = vpop.permute.xlu0 %1302  ;;  %v607_v15 = vpack.c.bf16 %v592_v63, %v591_v54  ;;  %v704_v60 = vsel %vm700_vm2, %v2070_v52, %v2099_v50  ;;  %v1365_v16 = vpack.c.b16 %v1356_v58, %v1347_v19  ;;  %v612_v17 = vpack.c.bf16 %v601_v9, %v600_v55 }
  0xd5   : > { %v705_v27 = vsel %vm700_vm2, %v2099_v50, %v2100_v3  ;;  %v721_v40 = vmul.f32 %v704_v60, %v2699_v28  ;;  %v730_v44 = vmul.f32 %v704_v60, %v2701_v29  ;;  %v1348_v19 = vunpack.c.h.b16 %v2707_v32 }
  0xd6   : > { %v994_v45 = vunpack.c.h.b16 %v607_v15  ;;  %v1003_v63 = vunpack.c.h.b16 %v612_v17  ;;  %v722_v52 = vmul.f32 %v705_v27, %v2681_v10  ;;  %v993_v55 = vunpack.c.l.b16 %v607_v15 }
  0xd7   : > { %v1002_v61 = vunpack.c.l.b16 %v612_v17  ;;  %v731_v50 = vmul.f32 %v705_v27, %v2711_v33  ;;  %v1357_v58 = vunpack.c.h.b16 %v2709_v46  ;;  %v513_v46 = vld [vmem:[%s2430_s14 + $0x18] sm:$0xff]  ;;  %v2110_v17 = vunpack.i.h.bf16 %v2674_v41 }
  0xd8   : > { %1094 = vrot.lane.b32.xlu0 %v1082_v36, %s2297_s25  ;;  %v1906_v36 = vld [vmem:[%s2430_s14 + $0x34] sm:$0xf0]  ;;  %v2109_v27 = vunpack.i.l.bf16 %v2674_v41 }
  0xd9   : > { %v2790_v32 = vpack.c.b16 %v1002_v61, %v993_v55  ;;  %v742_v15 = vpack.c.bf16 %v731_v50, %v730_v44  ;;  %v1366_v60 = vpack.c.b16 %v1357_v58, %v1348_v19 }
  0xda   : > { %1022 = vrot.lane.b32.xlu1 %v1010_v43, %s2298_s29  ;;  %1018 = vrot.lane.b32.xlu2 %v1008_v59, %s2298_s29  ;;  %v2760_v43 = vpack.c.bf16 %v783_v4, %v782_v12  ;;  %v2771_v59 = vpop.permute.xlu2 %1306  ;;  %v1321_v4 = vsel %vm1320_vm5, %v1303_v13, %v2667_v8  ;;  %v737_v13 = vpack.c.bf16 %v722_v52, %v721_v40  ;;  %v1904_v40 = vld [vmem:[%s2430_s14 + $0x10] sm:$0xf]  ;;  %v1941_v52 = vld [vmem:[%s2430_s14 + $0x30] sm:$0xf0] }
  0xdb   : > { %1420 = vmatpush.bf16.msra.mxu0 %v1321_v4  ;;  %v1181_v61 = vunpack.c.l.b16 %v742_v15  ;;  %v1182_v50 = vunpack.c.h.b16 %v742_v15  ;;  %v643_v58 = vsel %vm639_vm3, %v2080_v11, %v2109_v27  ;;  %v2834_v11 = vunpack.i.h.bf16 %v2613_v6 }
  0xdc   : > { %v2718_v0 = vpop.permute.xlu1 %2127  ;;  %v2773_v54 = vpop.permute.xlu0 %1308  ;;  %v1244_v9 = vunpack.c.l.b16 %v2760_v43  ;;  %v1172_v55 = vunpack.c.l.b16 %v737_v13  ;;  %v1173_v44 = vunpack.c.h.b16 %v737_v13  ;;  %v669_v15 = vmul.f32 %v643_v58, %v2701_v29 }
  0xdd   : > { %v2129_v39 = vunpack.i.l.bf16 %v2718_v0 }
  0xde   : > { %v1191_v1 = vpack.c.b16 %v1182_v50, %v1173_v44 }
  0xdf   : > { %v2741_v53 = vsel %vm570_vm0, %v2050_v57, %v2129_v39  ;;  %v991_v57 = vunpack.c.l.b16 %v2669_v48  ;;  %v2762_v48 = vpack.c.bf16 %v792_v56, %v791_v20  ;;  %v1323_v20 = vsel %vm1320_vm5, %v2771_v59, %v2773_v54 }
  0xe0   : > { %v2786_v56 = vor.u32 %v1937_v14, %v1906_v36  ;;  %1472 = vmatpush.bf16.msra.mxu1 %v1323_v20 }
  0xe1   : > { %v1009_v42 = vpack.c.b16 %v1000_v7, %v991_v57  ;;  %v1253_v12 = vunpack.c.l.b16 %v2762_v48  ;;  %v2788_v57 = vpack.c.b16 %v1003_v63, %v994_v45  ;;  %v518_v7 = vld [vmem:[%s2430_s14 + $0x3c] sm:$0xff]  ;;  %v2803_v45 = vunpack.c.h.bf16 %v513_v46 }
  0xe2   : > { %1378 = vrot.lane.b32.xlu1 %v1367_v23, %s2299_s30  ;;  %1374 = vrot.lane.b32.xlu2 %v1365_v16, %s2299_s30  ;;  %v2795_v23 = vunpack.i.h.bf16 %v2718_v0  ;;  %v2805_v63 = vunpack.c.l.bf16 %v518_v7  ;;  %v2807_v14 = vunpack.c.h.bf16 %v518_v7  ;;  %v2817_v19 = vpop.permute.xlu2 %1123  ;;  %v660_v7 = vmul.f32 %v643_v58, %v2699_v28 }
  0xe3   : > { %1020 = vrot.lane.b32.xlu0 %v1009_v42, %s2298_s29  ;;  %v1262_v16 = vpack.c.b16 %v1253_v12, %v1244_v9  ;;  %v2801_v42 = vunpack.c.l.bf16 %v513_v46  ;;  %v644_v9 = vsel %vm639_vm3, %v2109_v27, %v2110_v17  ;;  %v2825_v12 = vor.u32 %v1941_v52, %v1904_v40 }
  0xe4   : > { %v577_v36 = vsel %vm570_vm0, %v2129_v39, %v2795_v23  ;;  %v602_v4 = vmul.f32 %v2741_v53, %v2805_v63  ;;  %v1190_v46 = vpack.c.b16 %v1181_v61, %v1172_v55  ;;  %v661_v13 = vmul.f32 %v644_v9, %v2681_v10 }
  0xe5   : > { %v593_v0 = vmul.f32 %v2741_v53, %v2801_v42  ;;  %v594_v39 = vmul.f32 %v577_v36, %v2803_v45  ;;  %v603_v20 = vmul.f32 %v577_v36, %v2807_v14  ;;  %v2846_v40 = vunpack.i.h.bf16 %v2688_v2 }
  0xe6   : > { %v2114_v52 = vunpack.i.l.bf16 %v2688_v2  ;;  %v1245_v36 = vunpack.c.h.b16 %v2760_v43  ;;  %v1254_v55 = vunpack.c.h.b16 %v2762_v48 }
  0xe7   : > { %v608_v53 = vpack.c.bf16 %v594_v39, %v593_v0  ;;  %v613_v27 = vpack.c.bf16 %v603_v20, %v602_v4 }
  0xe8   : > { %v706_v43 = vsel %vm700_vm2, %v2100_v3, %v2114_v52  ;;  %v707_v51 = vsel %vm700_vm2, %v2114_v52, %v2846_v40  ;;  %v1263_v48 = vpack.c.b16 %v1254_v55, %v1245_v36 }
  0xe9   : > { %v995_v61 = vunpack.c.l.b16 %v608_v53  ;;  %v996_v44 = vunpack.c.h.b16 %v608_v53  ;;  %v1005_v50 = vunpack.c.h.b16 %v613_v27  ;;  %v724_v49 = vmul.f32 %v707_v51, %v2803_v45 }
  0xea   : > { %1312 = vrot.lane.b32.xlu1 %v2786_v56, %s2293_s9  ;;  %1275 = vrot.lane.b32.xlu2 %v1262_v16, %s2289_s20  ;;  %v670_v16 = vmul.f32 %v644_v9, %v2711_v33  ;;  %v2854_v9 = vpop.permute.xlu2 %1129  ;;  %v732_v3 = vmul.f32 %v706_v43, %v2805_v63 }
  0xeb   : > { %1376 = vrot.lane.b32.xlu0 %v1366_v60, %s2299_s30  ;;  %v2104_v60 = vunpack.i.l.bf16 %v2613_v6  ;;  %v1004_v6 = vunpack.c.l.b16 %v613_v27  ;;  %v2858_v39 = vpack.c.b16 %v1005_v50, %v996_v44 }
  0xec   : > { %v681_v4 = vpack.c.bf16 %v670_v16, %v669_v15  ;;  %v1942_v15 = vld [vmem:[%s2430_s14 + $0x38] sm:$0xf0]  ;;  %v1359_v16 = vunpack.c.h.b16 %v2705_v31 }
  0xed   : > { %v767_v58 = vsel %vm761_vm1, %v2095_v18, %v2104_v60  ;;  %v2856_v0 = vpack.c.b16 %v1004_v6, %v995_v61  ;;  %v768_v2 = vsel %vm761_vm1, %v2104_v60, %v2834_v11  ;;  %v676_v18 = vpack.c.bf16 %v661_v13, %v660_v7  ;;  %v1912_v13 = vld [vmem:[%s2430_s14 + $0x18] sm:$0xf] }
  0xee   : > { %v784_v20 = vmul.f32 %v767_v58, %v2801_v42  ;;  %v733_v7 = vmul.f32 %v707_v51, %v2807_v14  ;;  %v1350_v60 = vunpack.c.h.b16 %v2703_v30  ;;  %v793_v53 = vmul.f32 %v767_v58, %v2805_v63  ;;  %v1938_v58 = vld [vmem:[%s2430_s14 + $0x1c] sm:$0xf] }
  0xef   : > { %v794_v27 = vmul.f32 %v768_v2, %v2807_v14  ;;  %v1065_v52 = vunpack.c.l.b16 %v676_v18  ;;  %v1074_v36 = vunpack.c.l.b16 %v681_v4  ;;  %v2884_v55 = vor.u32 %v1942_v15, %v1912_v13 }
  0xf0   : > { %v1368_v61 = vpack.c.b16 %v1359_v16, %v1350_v60  ;;  %v2888_v44 = vpack.c.bf16 %v733_v7, %v732_v3 }
  0xf1   : > { %v1083_v50 = vpack.c.b16 %v1074_v36, %v1065_v52  ;;  %v2894_v31 = vpack.c.bf16 %v794_v27, %v793_v53  ;;  %v2927_v52 = vunpack.i.h.bf16 %v2724_v62  ;;  %v2124_v36 = vunpack.i.l.bf16 %v2724_v62 }
  0xf2   : > { %1203 = vrot.lane.b32.xlu1 %v1190_v46, %s2296_s22  ;;  %1205 = vrot.lane.b32.xlu2 %v1191_v1, %s2296_s22  ;;  %v785_v46 = vmul.f32 %v768_v2, %v2803_v45  ;;  %v723_v1 = vmul.f32 %v706_v43, %v2801_v42  ;;  %v2890_v43 = vpop.permute.xlu2 %944  ;;  %v1914_v2 = vld [vmem:[%s2430_s14 + $0x3c] sm:$0xf0] }
  0xf3   : > { %1310 = vrot.lane.b32.xlu0 %v2825_v12, %s2293_s9  ;;  %v2908_v3 = vor.u32 %v1938_v58, %v1914_v2  ;;  %v2930_v58 = vpop.permute.xlu1 %2132 }
  0xf4   : > { %v2886_v6 = vpack.c.bf16 %v724_v49, %v723_v1  ;;  %v2892_v30 = vpack.c.bf16 %v785_v46, %v784_v20  ;;  %v2120_v1 = vunpack.i.h.bf16 %v2636_v47  ;;  %v2119_v20 = vunpack.i.l.bf16 %v2636_v47 }
  0xf5   : > { %v1255_v49 = vunpack.c.l.b16 %v2894_v31 }
  0xf6   : > { %v1174_v51 = vunpack.c.l.b16 %v2886_v6  ;;  %v1246_v46 = vunpack.c.l.b16 %v2892_v30  ;;  %v826_v13 = vsel %vm822_vm4, %v2090_v5, %v2119_v20  ;;  %v827_v15 = vsel %vm822_vm4, %v2119_v20, %v2120_v1 }
  0xf7   : > { %v843_v53 = vmul.f32 %v826_v13, %v2699_v28  ;;  %v844_v26 = vmul.f32 %v827_v15, %v2681_v10  ;;  %v852_v5 = vmul.f32 %v826_v13, %v2701_v29  ;;  %v853_v27 = vmul.f32 %v827_v15, %v2711_v33 }
  0xf8   : > { %v1264_v60 = vpack.c.b16 %v1255_v49, %v1246_v46  ;;  %v645_v28 = vsel %vm639_vm3, %v2110_v17, %v2124_v36  ;;  %v646_v10 = vsel %vm639_vm3, %v2124_v36, %v2927_v52  ;;  %v1256_v36 = vunpack.c.h.b16 %v2894_v31  ;;  %v1943_v31 = vld [vmem:[%s2430_s14 + $0x40] sm:$0xf0] }
  0xf9   : > { %v859_v2 = vpack.c.bf16 %v844_v26, %v843_v53  ;;  %v662_v33 = vmul.f32 %v645_v28, %v2801_v42  ;;  %v663_v62 = vmul.f32 %v646_v10, %v2803_v45  ;;  %v671_v17 = vmul.f32 %v645_v28, %v2805_v63  ;;  %v514_v53 = vld [vmem:[%s2430_s14 + $0x20] sm:$0xf]  ;;  %v519_v26 = vld [vmem:[%s2430_s14 + $0x44] sm:$0xf] }
  0xfa   : > { %1131 = vrot.lane.b32.xlu1 %v2825_v12, %s2294_s11  ;;  %1133 = vrot.lane.b32.xlu2 %v2786_v56, %s2294_s11  ;;  %v2920_v16 = vpop.permute.xlu2 %950 }
  0xfb   : > { %1277 = vrot.lane.b32.xlu0 %v1263_v48, %s2289_s20  ;;  %v1183_v48 = vunpack.c.l.b16 %v2888_v44  ;;  %v1352_v20 = vunpack.c.h.b16 %v859_v2  ;;  %v2946_v46 = vpop.permute.xlu1 %1127  ;;  %v2948_v13 = vpack.c.bf16 %v663_v62, %v662_v33 }
  0xfd   : > { %v1192_v7 = vpack.c.b16 %v1183_v48, %v1174_v51  ;;  %v864_v51 = vpack.c.bf16 %v853_v27, %v852_v5  ;;  %v1247_v27 = vunpack.c.h.b16 %v2892_v30  ;;  %v1920_v30 = vld [vmem:[%s2430_s14 + $0x20] sm:$0xf] }
  0xff   : > { %v1360_v41 = vunpack.c.l.b16 %v864_v51 }
 0x102   : > { %1380 = vrot.lane.b32.xlu1 %v1368_v61, %s2299_s30  ;;  %1096 = vrot.lane.b32.xlu2 %v1083_v50, %s2297_s25  ;;  %v1066_v61 = vunpack.c.h.b16 %v676_v18  ;;  %v1075_v50 = vunpack.c.h.b16 %v681_v4  ;;  %v1351_v18 = vunpack.c.l.b16 %v859_v2  ;;  %v672_v4 = vmul.f32 %v646_v10, %v2807_v14 }
 0x103   : > { %1314 = vrot.lane.b32.xlu0 %v2884_v55, %s2293_s9  ;;  %v2966_v2 = vunpack.c.l.bf16 %v514_v53  ;;  %v2972_v10 = vpop.permute.xlu1 %948 }
 0x104   : > { %v1084_v29 = vpack.c.b16 %v1075_v50, %v1066_v61  ;;  %v1369_v49 = vpack.c.b16 %v1360_v41, %v1351_v18  ;;  %v2950_v15 = vpack.c.bf16 %v672_v4, %v671_v17  ;;  %v1067_v61 = vunpack.c.l.b16 %v2948_v13 }
 0x105   : > { %v786_v33 = vmul.f32 %v2834_v11, %v2966_v2  ;;  %v2986_v41 = vor.u32 %v1943_v31, %v1920_v30  ;;  %v725_v4 = vmul.f32 %v2846_v40, %v2966_v2 }
 0x106   : > { %v1076_v50 = vunpack.c.l.b16 %v2950_v15 }
 0x108   : > { %v1085_v28 = vpack.c.b16 %v1076_v50, %v1067_v61 }
 0x10a   : > { %1207 = vrot.lane.b32.xlu1 %v1192_v7, %s2296_s22  ;;  %1316 = vrot.lane.b32.xlu2 %v2908_v3, %s2293_s9 }
 0x10b   : > { %1279 = vrot.lane.b32.xlu0 %v1264_v60, %s2289_s20  ;;  %v2953_v60 = vpop.permute.xlu0 %1125 }
 0x112   : > { %1026 = vrot.lane.b32.xlu1 %v2788_v57, %s2298_s29  ;;  %1135 = vrot.lane.b32.xlu2 %v2884_v55, %s2294_s11  ;;  %v1361_v57 = vunpack.c.h.b16 %v864_v51  ;;  %v2968_v51 = vunpack.c.l.bf16 %v519_v26 }
 0x113   : > { %1098 = vrot.lane.b32.xlu0 %v1084_v29, %s2297_s25  ;;  %v2974_v29 = vpop.permute.xlu0 %946 }
 0x114   : > { %v1268_v48 = vpop.permute.xlu2 %1267  ;;  %v1370_v7 = vpack.c.b16 %v1361_v57, %v1352_v20  ;;  %v795_v62 = vmul.f32 %v2834_v11, %v2968_v51  ;;  %v734_v20 = vmul.f32 %v2846_v40, %v2968_v51  ;;  %v2134_v57 = vunpack.i.l.bf16 %v2930_v58 }
 0x115   : > { %v3000_v11 = vunpack.i.h.bf16 %v2930_v58  ;;  %v3007_v40 = vsel %vm1141_vm6, %v2953_v60, %v2946_v46  ;;  %v1184_v58 = vunpack.c.h.b16 %v2888_v44 }
 0x116   : > { %v805_v17 = vpack.c.bf16 %v795_v62, %v795_v62  ;;  %v828_v61 = vsel %vm822_vm4, %v2120_v1, %v2134_v57  ;;  %v744_v30 = vpack.c.bf16 %v734_v20, %v734_v20  ;;  %v595_v20 = vmul.f32 %v2795_v23, %v2966_v2 }
 0x117   : > { %v829_v50 = vsel %vm822_vm4, %v2134_v57, %v3000_v11  ;;  %v604_v57 = vmul.f32 %v2795_v23, %v2968_v51 }
 0x118   : > { %v1257_v53 = vunpack.c.l.b16 %v805_v17  ;;  %v846_v44 = vmul.f32 %v829_v50, %v2803_v45  ;;  %v855_v47 = vmul.f32 %v829_v50, %v2807_v14  ;;  %v1185_v62 = vunpack.c.l.b16 %v744_v30 }
 0x119   : > { %v1142_v14 = vsel %vm1141_vm6, %v2817_v19, %v2953_v60 }
 0x11a   : > { %1382 = vrot.lane.b32.xlu1 %v1369_v49, %s2299_s30  ;;  %1384 = vrot.lane.b32.xlu2 %v1370_v7, %s2299_s30 }
 0x11b   : > { %1024 = vrot.lane.b32.xlu0 %v2790_v32, %s2298_s29  ;;  %v1265_v32 = vpack.c.b16 %v1256_v36, %v1247_v27 }
 0x11c   : > { %v2960_v5 = vpop.permute.xlu2 %1273 }
 0x122   : > { %954 = vrot.lane.b32.xlu1 %v2786_v56, %s2295_s21  ;;  %1100 = vrot.lane.b32.xlu2 %v1085_v28, %s2297_s25  ;;  %v800_v56 = vpack.c.bf16 %v786_v33, %v786_v33  ;;  %v739_v28 = vpack.c.bf16 %v725_v4, %v725_v4 }
 0x123   : > { %1281 = vrot.lane.b32.xlu0 %v1265_v32, %s2289_s20 }
 0x124   : > { %v2984_v18 = vpop.permute.xlu2 %1199  ;;  %v1248_v7 = vunpack.c.l.b16 %v800_v56  ;;  %v1176_v33 = vunpack.c.l.b16 %v739_v28 }
 0x126   : > { %v1266_v32 = vpack.c.b16 %v1257_v53, %v1248_v7 }
 0x12a   : > { %1318 = vrot.lane.b32.xlu1 %v2986_v41, %s2293_s9  ;;  %1028 = vrot.lane.b32.xlu2 %v2856_v0, %s2298_s29  ;;  %v3009_v26 = vpop.permute.xlu0 %1269  ;;  %v1175_v0 = vunpack.c.h.b16 %v2886_v6  ;;  %v845_v6 = vmul.f32 %v828_v61, %v2801_v42  ;;  %v3038_v42 = vsel %vm962_vm7, %v2974_v29, %v2972_v10  ;;  %s2212_s9 = scalar_lea.hbm %s2211_s6, 32 }
 0x12b   : > { %952 = vrot.lane.b32.xlu0 %v2825_v12, %s2295_s21  ;;  %v1286_v36 = vsel %vm761_vm1, %v1268_v48, %v3009_v26  ;;  %v854_v48 = vmul.f32 %v828_v61, %v2805_v63  ;;  %v609_v61 = vpack.c.bf16 %v595_v20, %v595_v20  ;;  %p2213_p3 = scmp.ne.s32.totalorder %s2211_s6, %s2212_s9 }
 0x12c   : > { %v3002_v49 = vpop.permute.xlu1 %1271  ;;  %v3011_v27 = vpop.permute.xlu2 %1092  ;;  %1421 = vmatpush.bf16.msra.mxu0 %v1286_v36  ;;  %v1193_v31 = vpack.c.b16 %v1184_v58, %v1175_v0  ;;  %v860_v17 = vpack.c.bf16 %v846_v44, %v845_v6  ;;  %v1068_v0 = vunpack.c.h.b16 %v2948_v13  ;;  %v1077_v58 = vunpack.c.h.b16 %v2950_v15 }
 0x12d   : > { %v1288_v12 = vsel %vm761_vm1, %v3002_v49, %v2960_v5  ;;  %v865_v4 = vpack.c.bf16 %v855_v47, %v854_v48  ;;  %v847_v13 = vmul.f32 %v3000_v11, %v2966_v2  ;;  %v856_v15 = vmul.f32 %v3000_v11, %v2968_v51  ;;  %p2214_p5 = pnand %p2213_p3, %p2377_p8 }
 0x12e   : > { %1473 = vmatpush.bf16.msra.mxu1 %v1288_v12  ;;  %v1353_v53 = vunpack.c.l.b16 %v860_v17  ;;  %v1086_v50 = vpack.c.b16 %v1077_v58, %v1068_v0  ;;  %v997_v30 = vunpack.c.l.b16 %v609_v61  ;;  %v673_v6 = vmul.f32 %v2927_v52, %v2968_v51 }
 0x12f   : > { %v1362_v12 = vunpack.c.l.b16 %v865_v4  ;;  %v1354_v11 = vunpack.c.h.b16 %v860_v17  ;;  %p2215_p7 = pneg %p2214_p5 }
 0x131   : > { %v1371_v23 = vpack.c.b16 %v1362_v12, %v1353_v53  ;;  %v963_v12 = vsel %vm962_vm7, %v2890_v43, %v2974_v29  ;;  %v1409_v29 = vld [vmem:[#allocation5] sm:$0xff] }
 0x132   : > { %1283 = vrot.lane.b32.xlu1 %v1266_v32, %s2289_s20  ;;  %956 = vrot.lane.b32.xlu2 %v2884_v55, %s2295_s21  ;;  %v1196_v45 = vpop.permute.xlu0 %1195  ;;  %v1194_v55 = vpack.c.b16 %v1185_v62, %v1176_v33  ;;  %v1144_v32 = vsel %vm1141_vm6, %v2946_v46, %v2854_v9  ;;  %v664_v46 = vmul.f32 %v2927_v52, %v2966_v2  ;;  %v1363_v33 = vunpack.c.h.b16 %v865_v4  ;;  %s1695_s20 = sshll.u32 %s3325_s8, 4  ;;  %s1696_s20 = int_to_ptr.vmem [resolvable:$true] %s1695_s20 }
 0x133   : > { %1209 = vrot.lane.b32.xlu0 %v1193_v31, %s2296_s22  ;;  %v861_v62 = vpack.c.bf16 %v847_v13, %v847_v13 }
 0x134   : > { %v3033_v1 = vpop.permute.xlu1 %1197  ;;  %v3040_v56 = vpop.permute.xlu2 %1018  ;;  %v1372_v2 = vpack.c.b16 %v1363_v33, %v1354_v11 }
 0x135   : > { %v1214_v63 = vsel %vm1213_vm8, %v1196_v45, %v3033_v1  ;;  %v866_v45 = vpack.c.bf16 %v856_v15, %v856_v15  ;;  %v1355_v17 = vunpack.c.l.b16 %v861_v62  ;;  %v454_v15 = vld [vmem:[%s2430_s14] sm:$0xff] }
 0x136   : > { %1422 = vmatpush.bf16.msra.mxu0 %v1214_v63  ;;  %v678_v63 = vpack.c.bf16 %v664_v46, %v664_v46  ;;  %v1322_v46 = vsel %vm1320_vm5, %v2667_v8, %v2771_v59  ;;  %v1287_v8 = vsel %vm761_vm1, %v3009_v26, %v3002_v49 }
 0x137   : > { %v1364_v4 = vunpack.c.l.b16 %v866_v45 }
 0x139   : > { %v1373_v58 = vpack.c.b16 %v1364_v4, %v1355_v17 }
 0x13a   : > { %1211 = vrot.lane.b32.xlu1 %v1194_v55, %s2296_s22  ;;  %1423 = vmatpush.bf16.msra.mxu0 %v1142_v14  ;;  %v3058_v19 = vpop.permute.xlu0 %1201  ;;  %v683_v55 = vpack.c.bf16 %v673_v6, %v673_v6  ;;  %s2216_s22 = scalar_lea.hbm %s3380_s2, 64 }
 0x13b   : > { %1137 = vrot.lane.b32.xlu0 %v2908_v3, %s2294_s11  ;;  %1030 = vrot.lane.b32.xlu2 %v2858_v39, %s2298_s29  ;;  %v1216_v36 = vsel %vm1213_vm8, %v2984_v18, %v3058_v19  ;;  %v614_v39 = vpack.c.bf16 %v604_v57, %v604_v57  ;;  %v1069_v57 = vunpack.c.l.b16 %v678_v63  ;;  %v1215_v63 = vsel %vm1213_vm8, %v3033_v1, %v2984_v18  ;;  %p2218_p12 = scmp.lt.s32.totalorder %s2216_s22, %s2212_s9 }
 0x13c   : > { %v3056_v7 = vpop.permute.xlu1 %1090  ;;  %v3060_v60 = vpop.permute.xlu2 %1374  ;;  %1474 = vmatpush.bf16.msra.mxu1 %v1216_v36  ;;  %v1078_v53 = vunpack.c.l.b16 %v683_v55 }
 0x13d   : > { %v1006_v31 = vunpack.c.l.b16 %v614_v39  ;;  %v1108_v18 = vsel %vm1106_vm9, %v3056_v7, %v3011_v27  ;;  %p2219_p0 = por %p2218_p12, %p2217_p11 }
 0x13e   : > { %v1087_v36 = vpack.c.b16 %v1078_v53, %v1069_v57  ;;  %v455_v57 = vld [vmem:[%s2430_s14 + $0x8] sm:$0xff] }
 0x13f   : > { %v459_v53 = vld [vmem:[%s2430_s14 + $0x2c] sm:$0xff]  ;;  %p2220_p1 = pnand %p2219_p0, %p2215_p7 }
 0x140   : > { %1475 = vmatpush.bf16.msra.mxu1 %v1144_v32  ;;  %v1412_v32 = vunpack.c.h.b16 %v1409_v29  ;;  %v473_v1 = vunpack.c.h.bf16 %v459_v53 }
 0x142   : > { %1386 = vrot.lane.b32.xlu1 %v1371_v23, %s2299_s30  ;;  %v1089_v44 = vpop.permute.xlu0 %1088 }
 0x143   : > { %1102 = vrot.lane.b32.xlu0 %v1086_v50, %s2297_s25  ;;  %958 = vrot.lane.b32.xlu2 %v2908_v3, %s2295_s21  ;;  %v1107_v47 = vsel %vm1106_vm9, %v1089_v44, %v3056_v7  ;;  %v1015_v3 = vpack.c.b16 %v1006_v31, %v997_v30  ;;  %v965_v50 = vsel %vm962_vm7, %v2972_v10, %v2920_v16  ;;  %v462_v44 = vunpack.c.l.bf16 %v454_v15 }
 0x144   : > { %v1017_v28 = vpop.permute.xlu1 %1016  ;;  %v3082_v48 = vpop.permute.xlu2 %1275  ;;  %1424 = vmatpush.bf16.msra.mxu0 %v1107_v47  ;;  %v463_v47 = vunpack.c.h.bf16 %v454_v15  ;;  %v497_v15 = vmul.f32 %v2447_v22, %v473_v1 }
 0x145   : > { %v1035_v52 = vsel %vm1034_vm10, %v1017_v28, %v3040_v56  ;;  %v458_v28 = vld [vmem:[%s2430_s14 + $0x24] sm:$0xff]  ;;  %v486_v59 = vmul.f32 %v2454_v24, %v462_v44 }
 0x146   : > { %v470_v11 = vunpack.c.l.bf16 %v458_v28  ;;  %v471_v33 = vunpack.c.h.bf16 %v458_v28 }
 0x148   : > { %1425 = vmatpush.bf16.msra.mxu0 %v1035_v52  ;;  %v495_v62 = vmul.f32 %v2456_v25, %v471_v33 }
 0x14a   : > { %1032 = vrot.lane.b32.xlu1 %v1015_v3, %s2298_s29  ;;  %v3094_v14 = vpop.permute.xlu0 %1094  ;;  %v494_v3 = vmul.f32 %v2454_v24, %v470_v11 }
 0x14b   : > { %1139 = vrot.lane.b32.xlu0 %v2986_v41, %s2294_s11  ;;  %1388 = vrot.lane.b32.xlu2 %v1372_v2, %s2299_s30  ;;  %v1109_v0 = vsel %vm1106_vm9, %v3011_v27, %v3094_v14 }
 0x14c   : > { %v3092_v51 = vpop.permute.xlu1 %1022  ;;  %v3096_v20 = vpop.permute.xlu2 %1205  ;;  %1426 = vmatpush.bf16.msra.mxu0 %v963_v12  ;;  %1476 = vmatpush.bf16.msra.mxu1 %v1109_v0  ;;  %v506_v2 = vpack.c.bf16 %v495_v62, %v494_v3  ;;  %v464_v0 = vunpack.c.l.bf16 %v455_v57 }
 0x14e   : > { %v883_v17 = vunpack.c.l.b16 %v506_v2 }
 0x152   : > { %1390 = vrot.lane.b32.xlu1 %v1373_v58, %s2299_s30  ;;  %v465_v58 = vunpack.c.h.bf16 %v455_v57 }
 0x153   : > { %1104 = vrot.lane.b32.xlu0 %v1087_v36, %s2297_s25  ;;  %v472_v36 = vunpack.c.l.bf16 %v459_v53 }
 0x154   : > { %v3106_v23 = vpop.permute.xlu1 %1378  ;;  %v3110_v39 = vpop.permute.xlu2 %1133 }
 0x155   : > { %v3108_v61 = vpop.permute.xlu0 %1020 }
 0x156   : > { %v1037_v43 = vsel %vm1034_vm10, %v3108_v61, %v3092_v51 }
 0x157   : > { %1477 = vmatpush.bf16.msra.mxu1 %v1037_v43  ;;  %v1411_v43 = vunpack.c.l.b16 %v1409_v29 }
 0x159   : > { %v3167_v28 = vpack.c.b16 %v1411_v43, %v1411_v43 }
 0x15b   : > { %960 = vrot.lane.b32.xlu0 %v2986_v41, %s2295_s21  ;;  %1478 = vmatpush.bf16.msra.mxu1 %v965_v50  ;;  %v3133_v41 = vpack.c.b16 %v1412_v32, %v1412_v32  ;;  %v489_v50 = vmul.f32 %v2447_v22, %v465_v58  ;;  %v496_v32 = vmul.f32 %v2444_v21, %v472_v36 }
 0x15c   : > { %v3120_v13 = vpop.permute.xlu1 %1312  ;;  %v3124_v31 = vpop.permute.xlu2 %1096 }
 0x15d   : > { %v1377_v30 = vpop.permute.xlu0 %1376  ;;  %v3174_v27 = vpack.c.bf16 %v497_v15, %v496_v32 }
 0x15e   : > { %v1393_v10 = vsel %vm1392_vm11, %v3060_v60, %v1377_v30  ;;  %v1394_v6 = vsel %vm1392_vm11, %v1377_v30, %v3106_v23  ;;  %v487_v60 = vmul.f32 %v2456_v25, %v463_v47 }
 0x15f   : > { %1440 = vmatpush.bf16.msra.mxu2 %v1393_v10  ;;  %1466 = vmatpush.bf16.msra.mxu3 %v1394_v6  ;;  %v884_v10 = vunpack.c.h.b16 %v506_v2  ;;  %v885_v44 = vunpack.c.l.b16 %v3174_v27  ;;  %v456_v2 = vld [vmem:[%s2430_s14 + $0x10] sm:$0xff] }
 0x160   : > { %v502_v55 = vpack.c.bf16 %v487_v60, %v486_v59  ;;  %v467_v57 = vunpack.c.h.bf16 %v456_v2 }
 0x162   : > { %1923 = vmatmul.msk.bf16.vlgmr.msra.gmra.mxu3 %vm1416_vm12, %v3133_v41  ;;  %1922 = vmatmul.msk.bf16.vlgmr.msra.gmra.mxu2 %vm1416_vm12, %v3133_v41  ;;  %v875_v52 = vunpack.c.l.b16 %v502_v55  ;;  %v876_v29 = vunpack.c.h.b16 %v502_v55  ;;  %v491_v36 = vmul.f32 %v2469_v35, %v467_v57 }
 0x163   : > { %1446 = vmatpush.bf16.msrb.mxu2 %v1322_v46  ;;  %v1036_v46 = vsel %vm1034_vm10, %v3040_v56, %v3108_v61 }
 0x164   : > { %v3146_v45 = vpop.permute.xlu1 %1203  ;;  %v3148_v26 = vpop.permute.xlu2 %1316  ;;  %v891_v24 = vpack.c.b16 %v883_v17, %v875_v52  ;;  %v892_v11 = vpack.c.b16 %v884_v10, %v876_v29  ;;  %v460_v52 = vld [vmem:[%s2430_s14 + $0x34] sm:$0xff] }
 0x165   : > { %v1311_v49 = vpop.permute.xlu0 %1310  ;;  %v474_v53 = vunpack.c.l.bf16 %v460_v52 }
 0x166   : > { %1427 = vmatpush.bf16.msra.mxu0 %v891_v24  ;;  %v1324_v56 = vsel %vm1320_vm5, %v2773_v54, %v1311_v49  ;;  %v1325_v54 = vsel %vm1320_vm5, %v1311_v49, %v3120_v13 }
 0x167   : > { %1447 = vmatpush.bf16.msrb.mxu2 %v1287_v8 }
 0x169   : > { %1428 = vmatmul.bf16.vlgmr.msra.gmra.mxu0 %v3167_v28 }
 0x16b   : > { %1448 = vmatpush.bf16.msrb.mxu2 %v1215_v63 }
 0x16c   : > { %v1132_v25 = vpop.permute.xlu1 %1131  ;;  %v3158_v12 = vpop.permute.xlu2 %1135 }
 0x16d   : > { %v3154_v4 = vpop.permute.xlu0 %1277  ;;  %v1145_v60 = vsel %vm1141_vm6, %v2854_v9, %v1132_v25  ;;  %v1146_v49 = vsel %vm1141_vm6, %v1132_v25, %v3110_v39 }
 0x16f   : > { %1449 = vmatpush.bf16.msrb.mxu2 %v3007_v40  ;;  %v488_v40 = vmul.f32 %v2444_v21, %v464_v0  ;;  %v475_v0 = vunpack.c.h.bf16 %v460_v52 }
 0x171   : > { %v3169_v30 = vpack.c.bf16 %v489_v50, %v488_v40  ;;  %v499_v1 = vmul.f32 %v2469_v35, %v475_v0  ;;  %v886_v35 = vunpack.c.h.b16 %v3174_v27 }
 0x173   : > { %1450 = vmatpush.bf16.msrb.mxu2 %v1108_v18  ;;  %v877_v21 = vunpack.c.l.b16 %v3169_v30  ;;  %v498_v18 = vmul.f32 %v2467_v34, %v474_v53 }
 0x174   : > { %v1381_v7 = vpop.permute.xlu1 %1380  ;;  %v3185_v47 = vpop.permute.xlu2 %1384 }
 0x175   : > { %v3178_v6 = vpop.permute.xlu0 %1314  ;;  %v1395_v22 = vsel %vm1392_vm11, %v3106_v23, %v1381_v7  ;;  %v893_v61 = vpack.c.b16 %v885_v44, %v877_v21  ;;  %v1289_v23 = vsel %vm761_vm1, %v2960_v5, %v3082_v48  ;;  %v1290_v5 = vsel %vm761_vm1, %v3082_v48, %v3154_v4 }
 0x176   : > { %1492 = vmatpush.bf16.msrb.mxu3 %v1395_v22  ;;  %v1110_v48 = vsel %vm1106_vm9, %v3094_v14, %v3124_v31  ;;  %v1326_v24 = vsel %vm1320_vm5, %v3120_v13, %v3178_v6  ;;  %v508_v15 = vpack.c.bf16 %v499_v1, %v498_v18 }
 0x177   : > { %1451 = vmatpush.bf16.msrb.mxu2 %v1036_v46  ;;  %1479 = vmatpush.bf16.msra.mxu1 %v893_v61  ;;  %v1147_v46 = vsel %vm1141_vm6, %v3110_v39, %v3158_v12 }
 0x178   : > { %v887_v29 = vunpack.c.l.b16 %v508_v15 }
 0x179   : > { %1924 = vmatmul.msk.bf16.vlgmr.msrb.gmra.mxu3 %vm1416_vm12, %v3133_v41 }
 0x17a   : > { %1498 = vmatpush.bf16.msra.mxu3 %v1324_v56  ;;  %1480 = vmatmul.bf16.vlgmr.msra.gmra.mxu1 %v3167_v28 }
 0x17b   : > { %1452 = vmatpush.bf16.msrb.mxu2 %v3038_v42  ;;  %v1217_v42 = vsel %vm1213_vm8, %v3058_v19, %v3146_v45  ;;  %v1218_v19 = vsel %vm1213_vm8, %v3146_v45, %v3096_v20 }
 0x17c   : > { %v3195_v33 = vpop.permute.xlu1 %1207  ;;  %v3207_v59 = vpop.permute.xlu2 %1100 }
 0x17d   : > { %v3198_v8 = vpop.permute.xlu0 %1279 }
 0x17e   : > { %1499 = vmatpush.bf16.msra.mxu3 %v1289_v23  ;;  %v1291_v13 = vsel %vm761_vm1, %v3154_v4, %v3198_v8  ;;  %v1219_v4 = vsel %vm1213_vm8, %v3096_v20, %v3195_v33  ;;  %v888_v23 = vunpack.c.h.b16 %v508_v15 }
 0x17f   : > { %1453 = vmatpush.bf16.msrb.mxu2 %v892_v11 }
 0x182   : > { %1500 = vmatpush.bf16.msra.mxu3 %v1217_v42  ;;  %1454 = vmatmul.bf16.vlgmr.msrb.gmra.mxu2 %v3167_v28 }
 0x183   : > { %1524 = vmatpush.bf16.msra.mxu2 %v1325_v54 }
 0x184   : > { %v3211_v3 = vpop.permute.xlu1 %1026  ;;  %v3221_v63 = vpop.permute.xlu2 %1028 }
 0x185   : > { %v1099_v62 = vpop.permute.xlu0 %1098 }
 0x186   : > { %1501 = vmatpush.bf16.msra.mxu3 %v1145_v60  ;;  %v1111_v55 = vsel %vm1106_vm9, %v3124_v31, %v1099_v62  ;;  %v466_v31 = vunpack.c.l.bf16 %v456_v2  ;;  %v1112_v44 = vsel %vm1106_vm9, %v1099_v62, %v3207_v59  ;;  %v457_v62 = vld [vmem:[%s2430_s14 + $0x18] sm:$0xff] }
 0x187   : > { %1525 = vmatpush.bf16.msra.mxu2 %v1290_v5 }
 0x18a   : > { %1502 = vmatpush.bf16.msra.mxu3 %v1110_v48  ;;  %v461_v48 = vld [vmem:[%s2430_s14 + $0x3c] sm:$0xff] }
 0x18b   : > { %1526 = vmatpush.bf16.msra.mxu2 %v1218_v19  ;;  %v476_v2 = vunpack.c.l.bf16 %v461_v48  ;;  %v477_v52 = vunpack.c.h.bf16 %v461_v48 }
 0x18c   : > { %v1383_v9 = vpop.permute.xlu1 %1382  ;;  %v3250_v50 = vpop.permute.xlu2 %956 }
 0x18d   : > { %v1025_v45 = vpop.permute.xlu0 %1024  ;;  %v1396_v17 = vsel %vm1392_vm11, %v1381_v7, %v1383_v9  ;;  %v1397_v14 = vsel %vm1392_vm11, %v1383_v9, %v3185_v47 }
 0x18e   : > { %v1038_v25 = vsel %vm1034_vm10, %v3092_v51, %v1025_v45  ;;  %1518 = vmatpush.bf16.msrb.mxu0 %v1396_v17  ;;  %1544 = vmatpush.bf16.msrb.mxu1 %v1397_v14  ;;  %v1039_v58 = vsel %vm1034_vm10, %v1025_v45, %v3211_v3  ;;  %v490_v51 = vmul.f32 %v2467_v34, %v466_v31  ;;  %v878_v34 = vunpack.c.h.b16 %v3169_v30 }
 0x18f   : > { %1527 = vmatpush.bf16.msra.mxu2 %v1146_v49  ;;  %1503 = vmatpush.bf16.msra.mxu3 %v1038_v25  ;;  %v1327_v30 = vsel %vm1320_vm5, %v3178_v6, %v3148_v26  ;;  %v500_v17 = vmul.f32 %v2475_v37, %v476_v2  ;;  %v501_v14 = vmul.f32 %v2477_v38, %v477_v52 }
 0x190   : > { %v504_v32 = vpack.c.bf16 %v491_v36, %v490_v51  ;;  %v894_v39 = vpack.c.b16 %v886_v35, %v878_v34 }
 0x191   : > { %1925 = vmatmul.msk.bf16.vlgmr.msrb.gmra.mxu0 %vm1416_vm12, %v3133_v41  ;;  %1926 = vmatmul.msk.bf16.vlgmr.msrb.gmra.mxu1 %vm1416_vm12, %v3133_v41 }
 0x192   : > { %1550 = vmatpush.bf16.msra.mxu0 %v1326_v24  ;;  %v879_v7 = vunpack.c.l.b16 %v504_v32  ;;  %v880_v11 = vunpack.c.h.b16 %v504_v32 }
 0x193   : > { %1528 = vmatpush.bf16.msra.mxu2 %v1111_v55  ;;  %v469_v55 = vunpack.c.h.bf16 %v457_v62 }
 0x194   : > { %v955_v43 = vpop.permute.xlu1 %954  ;;  %v895_v56 = vpack.c.b16 %v887_v29, %v879_v7  ;;  %v896_v5 = vpack.c.b16 %v888_v23, %v880_v11 }
 0x195   : > { %v3248_v40 = vpop.permute.xlu0 %1281  ;;  %v3265_v61 = vpop.permute.xlu2 %1030  ;;  %v968_v6 = vsel %vm962_vm7, %v955_v43, %v3250_v50 }
 0x196   : > { %1551 = vmatpush.bf16.msra.mxu0 %v1291_v13  ;;  %v1292_v42 = vsel %vm761_vm1, %v3198_v8, %v3248_v40  ;;  %v468_v8 = vunpack.c.l.bf16 %v457_v62 }
 0x197   : > { %1529 = vmatpush.bf16.msra.mxu2 %v1039_v58 }
 0x198   : > { %v492_v45 = vmul.f32 %v2475_v37, %v468_v8 }
 0x19a   : > { %1552 = vmatpush.bf16.msra.mxu0 %v1219_v4 }
 0x19c   : > { %v1319_v10 = vpop.permute.xlu1 %1318 }
 0x19d   : > { %v953_v21 = vpop.permute.xlu0 %952  ;;  %v3280_v60 = vpop.permute.xlu2 %958  ;;  %v1328_v53 = vsel %vm1320_vm5, %v3148_v26, %v1319_v10 }
 0x19e   : > { %1553 = vmatpush.bf16.msra.mxu0 %v1147_v46  ;;  %v966_v22 = vsel %vm962_vm7, %v2920_v16, %v953_v21  ;;  %v967_v20 = vsel %vm962_vm7, %v953_v21, %v955_v43  ;;  %v1040_v16 = vsel %vm1034_vm10, %v3211_v3, %v3221_v63  ;;  %v969_v36 = vsel %vm962_vm7, %v3250_v50, %v3280_v60 }
 0x19f   : > { %1504 = vmatpush.bf16.msra.mxu3 %v966_v22  ;;  %1530 = vmatpush.bf16.msra.mxu2 %v967_v20 }
 0x1a2   : > { %1554 = vmatpush.bf16.msra.mxu0 %v1112_v44 }
 0x1a3   : > { %1505 = vmatpush.bf16.msra.mxu3 %v894_v39  ;;  %1531 = vmatpush.bf16.msra.mxu2 %v895_v56 }
 0x1a4   : > { %v1284_v27 = vpop.permute.xlu1 %1283 }
 0x1a5   : > { %v1210_v54 = vpop.permute.xlu0 %1209  ;;  %v1389_v24 = vpop.permute.xlu2 %1388  ;;  %v1293_v26 = vsel %vm761_vm1, %v3248_v40, %v1284_v27 }
 0x1a6   : > { %1555 = vmatpush.bf16.msra.mxu0 %v1040_v16  ;;  %1506 = vmatmul.bf16.vlgmr.msra.gmra.mxu3 %v3167_v28  ;;  %v1220_v3 = vsel %vm1213_vm8, %v3195_v33, %v1210_v54  ;;  %v493_v33 = vmul.f32 %v2477_v38, %v469_v55  ;;  %v509_v38 = vpack.c.bf16 %v501_v14, %v500_v17 }
 0x1a7   : > { %1576 = vmatpush.bf16.msrb.mxu3 %v1327_v30  ;;  %1532 = vmatmul.bf16.vlgmr.msra.gmra.mxu2 %v3167_v28 }
 0x1a8   : > { %v505_v37 = vpack.c.bf16 %v493_v33, %v492_v45  ;;  %v889_v58 = vunpack.c.l.b16 %v509_v38  ;;  %v890_v46 = vunpack.c.h.b16 %v509_v38 }
 0x1aa   : > { %1556 = vmatpush.bf16.msra.mxu0 %v968_v6  ;;  %v882_v15 = vunpack.c.h.b16 %v505_v37 }
 0x1ab   : > { %1577 = vmatpush.bf16.msrb.mxu3 %v1292_v42 }
 0x1ac   : > { %v1212_v19 = vpop.permute.xlu1 %1211  ;;  %v898_v7 = vpack.c.b16 %v890_v46, %v882_v15 }
 0x1ad   : > { %v1138_v49 = vpop.permute.xlu0 %1137  ;;  %v1221_v18 = vsel %vm1213_vm8, %v1210_v54, %v1212_v19 }
 0x1ae   : > { %1557 = vmatpush.bf16.msra.mxu0 %v896_v5  ;;  %v1148_v9 = vsel %vm1141_vm6, %v3158_v12, %v1138_v49 }
 0x1af   : > { %1578 = vmatpush.bf16.msrb.mxu3 %v1220_v3 }
 0x1b1   : > { %1558 = vmatmul.bf16.vlgmr.msra.gmra.mxu0 %v3167_v28 }
 0x1b3   : > { %1579 = vmatpush.bf16.msrb.mxu3 %v1148_v9 }
 0x1b4   : > { %v1387_v25 = vpop.permute.xlu1 %1386 }
 0x1b5   : > { %v1103_v31 = vpop.permute.xlu0 %1102  ;;  %v1398_v12 = vsel %vm1392_vm11, %v3185_v47, %v1387_v25  ;;  %v1399_v57 = vsel %vm1392_vm11, %v1387_v25, %v1389_v24  ;;  %v1041_v47 = vsel %vm1034_vm10, %v3221_v63, %v3265_v61 }
 0x1b6   : > { %1570 = vmatpush.bf16.msra.mxu1 %v1398_v12  ;;  %v1113_v0 = vsel %vm1106_vm9, %v3207_v59, %v1103_v31  ;;  %1596 = vmatpush.bf16.msrb.mxu2 %v1399_v57  ;;  %v881_v59 = vunpack.c.l.b16 %v505_v37 }
 0x1b7   : > { %1580 = vmatpush.bf16.msrb.mxu3 %v1113_v0 }
 0x1b8   : > { %v897_v1 = vpack.c.b16 %v889_v58, %v881_v59 }
 0x1b9   : > { %1927 = vmatmul.msk.bf16.vlgmr.msra.gmra.mxu1 %vm1416_vm12, %v3133_v41  ;;  %1928 = vmatmul.msk.bf16.vlgmr.msrb.gmra.mxu2 %vm1416_vm12, %v3133_v41 }
 0x1ba   : > { %1602 = vmatpush.bf16.msrb.mxu1 %v1328_v53 }
 0x1bb   : > { %1581 = vmatpush.bf16.msrb.mxu3 %v1041_v47 }
 0x1bc   : > { %v1033_v13 = vpop.permute.xlu1 %1032 }
 0x1bd   : > { %v1140_v51 = vpop.permute.xlu0 %1139  ;;  %v1042_v50 = vsel %vm1034_vm10, %v3265_v61, %v1033_v13 }
 0x1be   : > { %1603 = vmatpush.bf16.msrb.mxu1 %v1293_v26  ;;  %v1149_v63 = vsel %vm1141_vm6, %v1138_v49, %v1140_v51 }
 0x1bf   : > { %1582 = vmatpush.bf16.msrb.mxu3 %v969_v36 }
 0x1c2   : > { %1604 = vmatpush.bf16.msrb.mxu1 %v1221_v18 }
 0x1c3   : > { %1583 = vmatpush.bf16.msrb.mxu3 %v897_v1 }
 0x1c4   : > { %v1391_v43 = vpop.permute.xlu1 %1390 }
 0x1c5   : > { %v1105_v40 = vpop.permute.xlu0 %1104  ;;  %v1400_v4 = vsel %vm1392_vm11, %v1389_v24, %v1391_v43 }
 0x1c6   : > { %1605 = vmatpush.bf16.msrb.mxu1 %v1149_v63  ;;  %1584 = vmatmul.bf16.vlgmr.msrb.gmra.mxu3 %v3167_v28  ;;  %v1114_v32 = vsel %vm1106_vm9, %v1103_v31, %v1105_v40 }
 0x1c7   : > { %1622 = vmatpush.bf16.msrb.mxu0 %v1400_v4 }
 0x1ca   : > { %1606 = vmatpush.bf16.msrb.mxu1 %v1114_v32  ;;  %1929 = vmatmul.msk.bf16.vlgmr.msrb.gmra.mxu0 %vm1416_vm12, %v3133_v41 }
 0x1cd   : > { %v961_v34 = vpop.permute.xlu0 %960 }
 0x1ce   : > { %1607 = vmatpush.bf16.msrb.mxu1 %v1042_v50  ;;  %v970_v35 = vsel %vm962_vm7, %v3280_v60, %v961_v34 }
 0x1d2   : > { %1608 = vmatpush.bf16.msrb.mxu1 %v970_v35 }
 0x1d6   : > { %1609 = vmatpush.bf16.msrb.mxu1 %v898_v7 }
 0x1d9   : > { %1610 = vmatmul.bf16.vlgmr.msrb.gmra.mxu1 %v3167_v28 }
 0x1e5   : > { %v1442_v29 = vpop.f32.mrf.mxu2  ;;  %v1468_v10 = vpop.f32.mrf.mxu3 }
 0x1e6   : > { %v1429_v22 = vpop.f32.mrf.mxu0 }
 0x1e7   : > { %v1443_v56 = vadd.f32 %v1442_v29, %v1429_v22 }
 0x1e9   : > { %v1639_v16 = vmul.f32 %v1443_v56, %v1443_v56 }
 0x1ed   : > { %v1444_v21 = vpop.f32.mrf.mxu2  ;;  %v1470_v41 = vpop.f32.mrf.mxu3 }
 0x1ee   : > { %v1431_v20 = vpop.f32.mrf.mxu0 }
 0x1f7   : > { %v1481_v44 = vpop.f32.mrf.mxu1 }
 0x1fc   : > { %v1494_v39 = vpop.f32.mrf.mxu3 }
 0x1fd   : > { %v1495_v49 = vadd.f32 %v1494_v39, %v1481_v44 }
 0x1ff   : > { %v1483_v61 = vpop.f32.mrf.mxu1  ;;  %v1641_v53 = vmul.f32 %v1495_v49, %v1495_v49 }
 0x204   : > { %v1496_v11 = vpop.f32.mrf.mxu3 }
 0x205   : > { %v1455_v30 = vpop.f32.mrf.mxu2 }
 0x206   : > { %v1469_v27 = vadd.f32 %v1468_v10, %v1455_v30 }
 0x208   : > { %v1628_v23 = vadd.f32 %v1469_v27, %v1443_v56  ;;  %v1640_v54 = vmul.f32 %v1469_v27, %v1469_v27  ;;  %v1657_v6 = vpack.c.bf16 %v1469_v27, %v1443_v56 }
 0x20a   : > { %v1647_v42 = vadd.f32 %v1640_v54, %v1639_v16  ;;  %1661 = vst [vmem:[%s3325_s8] sm:$0xff] %v1657_v6  ;;  %v1629_v37 = vadd.f32 %v1628_v23, %v1495_v49 }
 0x20c   : > { %v1648_v47 = vadd.f32 %v1647_v42, %v1641_v53 }
 0x20d   : > { %v1457_v28 = vpop.f32.mrf.mxu2 }
 0x20e   : > { %v1520_v5 = vpop.f32.mrf.mxu0  ;;  %v1546_v60 = vpop.f32.mrf.mxu1 }
 0x216   : > { %v1522_v3 = vpop.f32.mrf.mxu0  ;;  %v1548_v19 = vpop.f32.mrf.mxu1 }
 0x229   : > { %v1507_v62 = vpop.f32.mrf.mxu3 }
 0x22a   : > { %v1533_v48 = vpop.f32.mrf.mxu2  ;;  %v1521_v9 = vadd.f32 %v1520_v5, %v1507_v62 }
 0x22b   : > { %v1547_v17 = vadd.f32 %v1546_v60, %v1533_v48 }
 0x22c   : > { %v1658_v8 = vpack.c.bf16 %v1521_v9, %v1495_v49  ;;  %v1642_v38 = vmul.f32 %v1521_v9, %v1521_v9  ;;  %v1630_v26 = vadd.f32 %v1629_v37, %v1521_v9 }
 0x22d   : > { %v1643_v58 = vmul.f32 %v1547_v17, %v1547_v17 }
 0x22e   : > { %v1559_v55 = vpop.f32.mrf.mxu0  ;;  %1662 = vst [vmem:[%s3325_s8 + $0x8] sm:$0xff] %v1658_v8  ;;  %v1649_v59 = vadd.f32 %v1648_v47, %v1642_v38  ;;  %v1631_v36 = vadd.f32 %v1630_v26, %v1547_v17 }
 0x230   : > { %v1650_v63 = vadd.f32 %v1649_v59, %v1643_v58 }
 0x231   : > { %v1509_v2 = vpop.f32.mrf.mxu3 }
 0x232   : > { %v1535_v52 = vpop.f32.mrf.mxu2 }
 0x236   : > { %v1561_v45 = vpop.f32.mrf.mxu0  ;;  %v1572_v33 = vpop.f32.mrf.mxu1 }
 0x237   : > { %v1573_v14 = vadd.f32 %v1572_v33, %v1559_v55 }
 0x239   : > { %v1659_v24 = vpack.c.bf16 %v1573_v14, %v1547_v17  ;;  %v1644_v18 = vmul.f32 %v1573_v14, %v1573_v14  ;;  %v1632_v43 = vadd.f32 %v1631_v36, %v1573_v14 }
 0x23b   : > { %1663 = vst [vmem:[%s3325_s8 + $0x10] sm:$0xff] %v1659_v24  ;;  %v1651_v15 = vadd.f32 %v1650_v63, %v1644_v18 }
 0x23c   : > { %v1598_v25 = vpop.f32.mrf.mxu2 }
 0x23e   : > { %v1574_v31 = vpop.f32.mrf.mxu1 }
 0x244   : > { %v1600_v12 = vpop.f32.mrf.mxu2 }
 0x247   : > { %v1624_v57 = vpop.f32.mrf.mxu0 }
 0x249   : > { %v1585_v0 = vpop.f32.mrf.mxu3 }
 0x24a   : > { %v1599_v13 = vadd.f32 %v1598_v25, %v1585_v0 }
 0x24c   : > { %v1645_v40 = vmul.f32 %v1599_v13, %v1599_v13  ;;  %v1633_v50 = vadd.f32 %v1632_v43, %v1599_v13 }
 0x24e   : > { %v1652_v7 = vadd.f32 %v1651_v15, %v1645_v40 }
 0x24f   : > { %v1626_v51 = vpop.f32.mrf.mxu0 }
 0x251   : > { %v1587_v1 = vpop.f32.mrf.mxu3 }
 0x256   : > { %v1611_v4 = vpop.f32.mrf.mxu1 }
 0x257   : > { %v1625_v32 = vadd.f32 %v1624_v57, %v1611_v4 }
 0x259   : > { %v1660_v46 = vpack.c.bf16 %v1625_v32, %v1599_v13  ;;  %v1634_v34 = vadd.f32 %v1633_v50, %v1625_v32  ;;  %v1646_v35 = vmul.f32 %v1625_v32, %v1625_v32 }
 0x25b   : > { %1664 = vst [vmem:[%s3325_s8 + $0x18] sm:$0xff] %v1660_v46  ;;  %1635 = vadd.xlane.f32.xlu2 %v1634_v34  ;;  %v1653_v29 = vadd.f32 %v1652_v7, %v1646_v35 }
 0x25c   : > { %2223 = shalt.err (!%p2220_p1)
}
 0x25d   : > { %1954 = dma.vmem_to_hbm [thread:$0]  (%p2377_p8), %s1696_s20, 512, %s1698_s24, %s1666_s26   ;;  %1654 = vadd.xlane.f32.xlu0 %v1653_v29  ;;  %vm1637_vm13 = vcmask 7168  }
 0x25e   : > { %v1613_v10 = vpop.f32.mrf.mxu1  ;;  %p278_p2 = scmp.lt.s32.totalorder %s2274_s18, 1 }
 0x260   : > { %s3406_s18 = smov (!%p278_p2, %s2274_s18), 1 }
 0x261   : > { %s1868_s13 = sshll.u32 %s3406_s18, 3 }
 0x262   : > { %s284_s8 = scalar_lea.vmem %s3381_s3, %s1868_s13  ;;  %s291_s14 = scalar_lea.vmem %s3382_s4, %s1868_s13 }
 0x2ce   : > { %v1636_v21 = vpop.xlane.xlu2 %1635 }
 0x2cf   : > { %1638 = vst.msk [vmem:[%s284_s8] sm:$0xff] %vm1637_vm13, %v1636_v21 }
 0x2d0   : > { %v1655_v41 = vpop.xlane.xlu0 %1654 }
 0x2d1   : > { %1656 = vst.msk [vmem:[%s291_s14] sm:$0xff] %vm1637_vm13, %v1655_v41 }
 0x2d2 PF: > { %s3397_s27 = sld [smem:[#allocation11_spill]]  ;;  %s1715_s1 = sand.u32 1, %s2262_s15  }
 0x2d3   : > { %p1965_p8 = pnand %p1863_p13, %p2381_p9  ;;  %s1716_s18 = scalar_lea.sflag [#allocation4], %s1715_s1 }
 0x2d5   : > { %p1966_p4 = pneg %p1965_p8 }
 0x2d7   : > { %2257 = dma.done.wait (%p1966_p4), %s1716_s18, 512  }
 0x2d8   : > { %2259 = vsyncadd (%p1966_p4), %s1716_s18, 4294966784  ;;  %s22_s20 = sadd.s32 1, %s3397_s27   ;;  %s3398_s15 = smov %s2266_s16 }
 0x2d9   : > { %p19_p6 = scmp.ge.s32.totalorder %s22_s20, 4   ;;  %s3399_s16 = smov %s2270_s17 }
 0x2da   : > { %s3400_s17 = smov %s2419_s7  ;;  %s3401_s18 = smov %s2278_s19 }
 0x2db   : > { %s3402_s19 = smov %s3404_s10  ;;  %21 = sbr.rel (!%p19_p6) target bundleno = 9 (0x9), region = 102 }
 0x2e0   :  { %1742 = vsyncpa [#allocation3], 1 }
 0x2e1   :  { %1744 = vsyncpa [#allocation3 + $0x1], 1 }
 0x2e2   :  { %1745 = vsyncpa [#allocation6], 1 }
 0x2e3   :  { %1746 = vsyncpa [#allocation4], 1 }
 0x2e4   :  { %1748 = vsyncpa [#allocation4 + $0x1], 1 }

</bundles_post_ra>
